<compile_context>
chip_gen: v7x
topology: tpu7x:2x2x1
jax: 0.10.0
libtpu: 0.0.40
codegen_flags: <defaults>
</compile_context>

<pallas_src>
import jax
import jax.numpy as jnp
from jax.experimental import pallas as pl
from jax.experimental.pallas import tpu as pltpu

EPS = 1e-5


def basic_block_kernel(x_ref, w1_ref, b1_ref, w2_ref, b2_ref, out_ref):
    # x_ref  : (B, H, W*Cin)          lane-dense input block (f32)
    # w1_ref : (3*W*Cin, W*Cmid)      banded conv1 weights (BN1 scale folded in)
    # b1_ref : (1, W*Cmid)            BN1 bias (f32)
    # w2_ref : (3*W*Cmid, W*Cout)     banded conv2 weights (BN2 scale folded in)
    # b2_ref : (1, W*Cout)            BN2 bias (f32)
    # out_ref: (B, H, W*Cout)
    B, H, WC_in = x_ref.shape
    WC_mid = b1_ref.shape[1]
    WC_out = out_ref.shape[2]
    R = B * H

    x = x_ref[...].reshape(R, WC_in)  # trivial retile: lane dim unchanged

    # Hoisted border masks: row-within-image index, shared by both convs.
    row = jax.lax.broadcasted_iota(jnp.int32, (B, H, 1), 1).reshape(R, 1)
    top = row == 0          # (R, 1): zero the "row above" for the first row
    bot = row == H - 1      # (R, 1): zero the "row below" for the last row

    def conv3x3(inp, w_ref, wc):
        # inp: (R, wc) f32; w_ref: (3*wc, wc_out).  Three accumulated MXU dots
        # against static row-block slices of the banded weights (dh = 0,1,2).
        dt = w_ref.dtype
        # row r sees inp[r-1]; mask kills the cyclic wrap / cross-image leak.
        up = jnp.where(top, 0.0, pltpu.roll(inp, shift=1, axis=0))
        # row r sees inp[r+1]; mask the bottom border row of every image.
        dn = jnp.where(bot, 0.0, pltpu.roll(inp, shift=R - 1, axis=0))
        acc = jnp.dot(up.astype(dt), w_ref[0:wc, :],
                      preferred_element_type=jnp.float32)
        acc = acc + jnp.dot(inp.astype(dt), w_ref[wc:2 * wc, :],
                            preferred_element_type=jnp.float32)
        acc = acc + jnp.dot(dn.astype(dt), w_ref[2 * wc:3 * wc, :],
                            preferred_element_type=jnp.float32)
        return acc  # (R, wc_out) f32

    # conv1 + bn1(bias) + relu              (f32 epilogue)
    out1 = jnp.maximum(conv3x3(x, w1_ref, WC_in) + b1_ref[...], 0.0)
    # conv2 + bn2(bias) + residual + relu   (requires Cin == Cout, stride 1)
    out = jnp.maximum(conv3x3(out1, w2_ref, WC_mid) + b2_ref[...] + x, 0.0)

    out_ref[...] = out.reshape(B, H, WC_out).astype(out_ref.dtype)


def build_row_conv_matrix(k_hwio, width):
    """Fold a 3x3 conv (pad=1, stride=1) over a lane-fused (W*Cin) row into a
    banded matmul weight of shape (3*W*Cin, W*Cout).

    Row block dh corresponds to the input row shifted by dh-1; within each
    block, entry [(w_out+dw-1)*Cin + ci, w_out*Cout + co] = k[dh, dw, ci, co]
    (out-of-range w handled by the zero band => 'same' padding along W)."""
    kh, kw, ci, co = k_hwio.shape
    blocks = []
    for dh in range(kh):
        m = jnp.zeros((width * ci, width * co), jnp.float32)
        for dw in range(kw):
            # shift[w_in, w_out] = 1  iff  w_in == w_out + dw - 1
            shift = jnp.eye(width, width, k=1 - dw, dtype=jnp.float32)
            m = m + jnp.einsum("ab,ij->aibj", shift,
                               k_hwio[dh, dw]).reshape(width * ci, width * co)
        blocks.append(m)
    return jnp.concatenate(blocks, axis=0)  # (3*W*Cin, W*Cout)


def prepare_block_params(params, width, matmul_dtype=jnp.bfloat16):
    """Fold eval-mode BN into the conv weights and build the banded matrices.
    Done once per block; the result is reused every forward call."""
    (w1, g1, be1, m1, v1, w2, g2, be2, m2, v2) = params
    cmid, cout = w1.shape[0], w2.shape[0]
    inv1 = g1 / jnp.sqrt(v1 + EPS)
    inv2 = g2 / jnp.sqrt(v2 + EPS)
    k1 = jnp.transpose(w1, (2, 3, 1, 0)).astype(jnp.float32) * inv1[None, None, None, :]
    k2 = jnp.transpose(w2, (2, 3, 1, 0)).astype(jnp.float32) * inv2[None, None, None, :]
    b1 = jnp.tile((be1 - m1 * inv1).astype(jnp.float32), width).reshape(1, width * cmid)
    b2 = jnp.tile((be2 - m2 * inv2).astype(jnp.float32), width).reshape(1, width * cout)
    w1_big = build_row_conv_matrix(k1, width).astype(matmul_dtype)  # (3*W*Cin,  W*Cmid)
    w2_big = build_row_conv_matrix(k2, width).astype(matmul_dtype)  # (3*W*Cmid, W*Cout)
    return w1_big, b1, w2_big, b2


def _pick_block_n(n, h, target_rows=256):
    """Largest batch block that keeps grid >= 2 (megacore sharding + DMA/compute
    overlap), preferring the smallest one that still gives >= target_rows MXU
    rows per matmul (128 fills v5e's MXU, 256 fills v6e/v7x)."""
    divisors = [d for d in range(1, n + 1) if n % d == 0]
    cands = [d for d in divisors if n // d >= 2] or divisors
    big_enough = [d for d in cands if d * h >= target_rows]
    return min(big_enough) if big_enough else max(cands)


def nchw_to_lane(x_nchw):
    n, c, h, w = x_nchw.shape
    return jnp.transpose(x_nchw, (0, 2, 3, 1)).reshape(n, h, w * c)


def lane_to_nchw(x_lane, c):
    n, h, wc = x_lane.shape
    return jnp.transpose(x_lane.reshape(n, h, wc // c, c), (0, 3, 1, 2))


def basic_block_apply_lane(x_lane, prepared, *, block_n=None):
    """Apply one BasicBlock to lane-fused activations (N, H, W*C) -> same shape.
    Chain these directly to avoid NCHW round trips between blocks."""
    w1_big, b1, w2_big, b2 = prepared
    N, H, WC_in = x_lane.shape
    WC_mid = b1.shape[1]
    WC_out = b2.shape[1]
    # Identity residual path only (stride=1, no downsample): Cin == Cout.
    assert WC_in == WC_out and w2_big.shape == (3 * WC_mid, WC_out), \
        "requires Cin == Cout, stride 1"
    if block_n is None:
        block_n = _pick_block_n(N, H)
    assert N % block_n == 0
    grid = (N // block_n,)

    w_bytes = (w1_big.size + w2_big.size) * w1_big.dtype.itemsize
    cost = pl.CostEstimate(
        flops=2 * N * H * (3 * WC_in * WC_mid + 3 * WC_mid * WC_out),
        transcendentals=0,
        bytes_accessed=(x_lane.size + N * H * WC_out) * 4
        + w_bytes + (b1.size + b2.size) * 4,
    )

    return pl.pallas_call(
        basic_block_kernel,
        out_shape=jax.ShapeDtypeStruct((N, H, WC_out), jnp.float32),
        grid_spec=pltpu.PrefetchScalarGridSpec(
            num_scalar_prefetch=0,
            grid=grid,
            in_specs=[
                pl.BlockSpec((block_n, H, WC_in), lambda n: (n, 0, 0)),
                pl.BlockSpec((3 * WC_in, WC_mid), lambda n: (0, 0)),
                pl.BlockSpec((1, WC_mid), lambda n: (0, 0)),
                pl.BlockSpec((3 * WC_mid, WC_out), lambda n: (0, 0)),
                pl.BlockSpec((1, WC_out), lambda n: (0, 0)),
            ],
            out_specs=pl.BlockSpec((block_n, H, WC_out), lambda n: (n, 0, 0)),
        ),
        # Default scoped VMEM is ample here; at real ResNet sizes set
        # vmem_limit_bytes (v7x: 64 MiB physical) and shrink block_n.
        compiler_params=pltpu.CompilerParams(
            dimension_semantics=("parallel",)),
        cost_estimate=cost,
    )(x_lane, w1_big, b1, w2_big, b2)


def basic_block_forward(x_nchw, params, *, block_n=None,
                        matmul_dtype=jnp.bfloat16):
    """Convenience single-block wrapper: (N, C, H, W) float32 -> (N, C, H, W).
    For stacks of blocks, convert to lane layout once and use
    basic_block_apply_lane() to avoid per-block NCHW round trips."""
    N, C, H, W = x_nchw.shape
    prepared = prepare_block_params(params, W, matmul_dtype)
    out_lane = basic_block_apply_lane(
        nchw_to_lane(x_nchw.astype(jnp.float32)), prepared, block_n=block_n)
    return lane_to_nchw(out_lane, C)


def reference_forward(x_nchw, params):
    """Pure-JAX reference matching the PyTorch BasicBlock (eval-mode BN)."""
    (w1, g1, be1, m1, v1, w2, g2, be2, m2, v2) = params

    def conv(x, w):
        return jax.lax.conv_general_dilated(
            x, w, window_strides=(1, 1), padding=((1, 1), (1, 1)),
            dimension_numbers=("NCHW", "OIHW", "NCHW"))

    def bn(x, g, b, m, v):
        c = x.shape[1]
        g, b, m, v = (t.reshape(1, c, 1, 1) for t in (g, b, m, v))
        return (x - m) / jnp.sqrt(v + EPS) * g + b

    out = jax.nn.relu(bn(conv(x_nchw, w1), g1, be1, m1, v1))
    out = bn(conv(out, w2), g2, be2, m2, v2)
    return jax.nn.relu(out + x_nchw)


def make_params(key, in_channels, out_channels, expansion=1):
    cmid = out_channels
    cout = out_channels * expansion
    k1, k2, k3, k4, k5, k6 = jax.random.split(key, 6)
    w1 = 0.1 * jax.random.normal(k1, (cmid, in_channels, 3, 3), jnp.float32)
    w2 = 0.1 * jax.random.normal(k2, (cout, cmid, 3, 3), jnp.float32)
    g1 = 1.0 + 0.05 * jax.random.normal(k3, (cmid,), jnp.float32)
    be1 = 0.05 * jax.random.normal(k4, (cmid,), jnp.float32)
    m1 = 0.02 * jax.random.normal(k5, (cmid,), jnp.float32)
    v1 = 1.0 + 0.1 * jax.random.uniform(k6, (cmid,), jnp.float32)
    g2 = 1.0 + 0.03 * jnp.arange(cout, dtype=jnp.float32) / cout
    be2 = 0.01 * jnp.arange(cout, dtype=jnp.float32)
    m2 = 0.01 * jnp.ones((cout,), jnp.float32)
    v2 = 1.0 + 0.05 * jnp.arange(cout, dtype=jnp.float32) / cout
    return (w1, g1, be1, m1, v1, w2, g2, be2, m2, v2)


if __name__ == "__main__":
    # BasicBlock(in=8, out=8, stride=1, expansion=1, downsample=None).
    # W * C = 16 * 8 = 128 -> the fused lane dimension is exactly one lane
    # group; N=16 lets the auto-picker use block_n=8 (M = 128 MXU rows) while
    # keeping grid=(2,) for megacore sharding / DMA-compute overlap.
    N, C, H, W = 16, 8, 16, 16
    key = jax.random.PRNGKey(0)
    kx, ka, kb = jax.random.split(key, 3)
    x = jax.random.normal(kx, (N, C, H, W), jnp.float32)
    params_a = make_params(ka, in_channels=C, out_channels=C, expansion=1)
    params_b = make_params(kb, in_channels=C, out_channels=C, expansion=1)

    # --- 1. f32 MXU operands via the NCHW wrapper: exact parity check with
    #        the PyTorch module semantics (tight tolerance).
    ref_a = jax.block_until_ready(reference_forward(x, params_a))
    out_f32 = jax.block_until_ready(
        basic_block_forward(x, params_a, matmul_dtype=jnp.float32))
    assert out_f32.shape == (N, C, H, W)
    assert jnp.max(jnp.abs(out_f32 - ref_a)) < 1e-4, "f32 Pallas kernel mismatch"

    # --- 2. bf16 MXU operands (default; v5e/v6e/v7x fast path), f32
    #        accumulation, two BasicBlocks chained in the lane-fused layout so
    #        no NCHW round trip happens between blocks.  Loose tolerance:
    #        bf16 rounding of activations/weights, not an accumulation issue.
    prep_a = prepare_block_params(params_a, W)   # bf16 default
    prep_b = prepare_block_params(params_b, W)
    x_lane = nchw_to_lane(x)
    y_lane = basic_block_apply_lane(x_lane, prep_a)
    z_lane = basic_block_apply_lane(y_lane, prep_b)
    out_chain = jax.block_until_ready(lane_to_nchw(z_lane, C))
    ref_chain = reference_forward(ref_a, params_b)
    assert out_chain.shape == (N, C, H, W)
    assert jnp.max(jnp.abs(out_chain - ref_chain)) < 2e-1, "bf16 Pallas kernel mismatch"

    print("KERNEL_OK")
</pallas_src>

<mosaic_0001>
module attributes {stable_mosaic.version = 11 : i64} {
  func.func @basic_block_kernel(%arg0: i32, %arg1: memref<8x16x128xf32, #tpu.memory_space<vmem>>, %arg2: memref<384x128xf32, #tpu.memory_space<vmem>>, %arg3: memref<1x128xf32, #tpu.memory_space<vmem>>, %arg4: memref<384x128xf32, #tpu.memory_space<vmem>>, %arg5: memref<1x128xf32, #tpu.memory_space<vmem>>, %arg6: memref<8x16x128xf32, #tpu.memory_space<vmem>>) attributes {dimension_semantics = [#tpu.dimension_semantics<parallel>], iteration_bounds = array<i64: 2>, scalar_prefetch = 0 : i64, scratch_operands = 0 : i64, tpu.core_type = #tpu.core_type<tc>, window_params = [{transform_indices = @transform_0, window_bounds = array<i64: 8, 16, 128>}, {pipeline_mode = #tpu.pipeline_mode<synchronous>, transform_indices = @transform_1, window_bounds = array<i64: 384, 128>}, {pipeline_mode = #tpu.pipeline_mode<synchronous>, transform_indices = @transform_2, window_bounds = array<i64: 1, 128>}, {pipeline_mode = #tpu.pipeline_mode<synchronous>, transform_indices = @transform_3, window_bounds = array<i64: 384, 128>}, {pipeline_mode = #tpu.pipeline_mode<synchronous>, transform_indices = @transform_4, window_bounds = array<i64: 1, 128>}, {transform_indices = @transform_5, window_bounds = array<i64: 8, 16, 128>}]} {
    %c0 = arith.constant 0 : index
    %c0_0 = arith.constant 0 : index
    %c0_1 = arith.constant 0 : index
    %0 = vector.load %arg1[%c0, %c0_0, %c0_1] : memref<8x16x128xf32, #tpu.memory_space<vmem>>, vector<8x16x128xf32>
    %1 = vector.shape_cast %0 : vector<8x16x128xf32> to vector<128x128xf32>
    %2 = tpu.iota {dimensions = array<i32: 1>} : vector<8x16x1xi32>
    %3 = vector.shape_cast %2 : vector<8x16x1xi32> to vector<128x1xi32>
    %c0_i32 = arith.constant 0 : i32
    %4 = vector.broadcast %c0_i32 : i32 to vector<128x1xi32>
    %5 = arith.cmpi eq, %3, %4 : vector<128x1xi32>
    %c15_i32 = arith.constant 15 : i32
    %6 = vector.broadcast %c15_i32 : i32 to vector<128x1xi32>
    %7 = arith.cmpi eq, %3, %6 : vector<128x1xi32>
    %c1_i32 = arith.constant 1 : i32
    %8 = tpu.dynamic_rotate %1 by %c1_i32 dim 0 : vector<128x128xf32>, i32 -> vector<128x128xf32>
    %cst = arith.constant 0.000000e+00 : f32
    %9 = vector.shape_cast %5 : vector<128x1xi1> to vector<128x1xi1>
    %10 = vector.broadcast %9 : vector<128x1xi1> to vector<128x128xi1>
    %11 = vector.broadcast %cst : f32 to vector<128x128xf32>
    %12 = arith.select %10, %11, %8 : vector<128x128xi1>, vector<128x128xf32>
    %c127_i32 = arith.constant 127 : i32
    %13 = tpu.dynamic_rotate %1 by %c127_i32 dim 0 : vector<128x128xf32>, i32 -> vector<128x128xf32>
    %cst_2 = arith.constant 0.000000e+00 : f32
    %14 = vector.shape_cast %7 : vector<128x1xi1> to vector<128x1xi1>
    %15 = vector.broadcast %14 : vector<128x1xi1> to vector<128x128xi1>
    %16 = vector.broadcast %cst_2 : f32 to vector<128x128xf32>
    %17 = arith.select %15, %16, %13 : vector<128x128xi1>, vector<128x128xf32>
    %c0_3 = arith.constant 0 : index
    %c0_4 = arith.constant 0 : index
    %18 = vector.load %arg2[%c0_3, %c0_4] : memref<384x128xf32, #tpu.memory_space<vmem>>, vector<128x128xf32>
    %cst_5 = arith.constant dense<0.000000e+00> : vector<128x128xf32>
    %19 = tpu.matmul %12, %18, %cst_5 {dimension_numbers = #tpu.dot_dimension_numbers<[1], [0], [0], [1], [0, 0, 1, 1], [], []>} : vector<128x128xf32>, vector<128x128xf32>, vector<128x128xf32> -> vector<128x128xf32>
    %c128 = arith.constant 128 : index
    %c0_6 = arith.constant 0 : index
    %20 = vector.load %arg2[%c128, %c0_6] : memref<384x128xf32, #tpu.memory_space<vmem>>, vector<128x128xf32>
    %cst_7 = arith.constant dense<0.000000e+00> : vector<128x128xf32>
    %21 = tpu.matmul %1, %20, %cst_7 {dimension_numbers = #tpu.dot_dimension_numbers<[1], [0], [0], [1], [0, 0, 1, 1], [], []>} : vector<128x128xf32>, vector<128x128xf32>, vector<128x128xf32> -> vector<128x128xf32>
    %22 = arith.addf %19, %21 : vector<128x128xf32>
    %c256 = arith.constant 256 : index
    %c0_8 = arith.constant 0 : index
    %23 = vector.load %arg2[%c256, %c0_8] : memref<384x128xf32, #tpu.memory_space<vmem>>, vector<128x128xf32>
    %cst_9 = arith.constant dense<0.000000e+00> : vector<128x128xf32>
    %24 = tpu.matmul %17, %23, %cst_9 {dimension_numbers = #tpu.dot_dimension_numbers<[1], [0], [0], [1], [0, 0, 1, 1], [], []>} : vector<128x128xf32>, vector<128x128xf32>, vector<128x128xf32> -> vector<128x128xf32>
    %25 = arith.addf %22, %24 : vector<128x128xf32>
    %c0_10 = arith.constant 0 : index
    %c0_11 = arith.constant 0 : index
    %26 = vector.load %arg3[%c0_10, %c0_11] : memref<1x128xf32, #tpu.memory_space<vmem>>, vector<1x128xf32>
    %27 = vector.broadcast %26 : vector<1x128xf32> to vector<128x128xf32>
    %28 = arith.addf %25, %27 : vector<128x128xf32>
    %cst_12 = arith.constant 0.000000e+00 : f32
    %29 = vector.broadcast %cst_12 : f32 to vector<128x128xf32>
    %30 = arith.maximumf %28, %29 : vector<128x128xf32>
    %c1_i32_13 = arith.constant 1 : i32
    %31 = tpu.dynamic_rotate %30 by %c1_i32_13 dim 0 : vector<128x128xf32>, i32 -> vector<128x128xf32>
    %cst_14 = arith.constant 0.000000e+00 : f32
    %32 = vector.shape_cast %5 : vector<128x1xi1> to vector<128x1xi1>
    %33 = vector.broadcast %32 : vector<128x1xi1> to vector<128x128xi1>
    %34 = vector.broadcast %cst_14 : f32 to vector<128x128xf32>
    %35 = arith.select %33, %34, %31 : vector<128x128xi1>, vector<128x128xf32>
    %c127_i32_15 = arith.constant 127 : i32
    %36 = tpu.dynamic_rotate %30 by %c127_i32_15 dim 0 : vector<128x128xf32>, i32 -> vector<128x128xf32>
    %cst_16 = arith.constant 0.000000e+00 : f32
    %37 = vector.shape_cast %7 : vector<128x1xi1> to vector<128x1xi1>
    %38 = vector.broadcast %37 : vector<128x1xi1> to vector<128x128xi1>
    %39 = vector.broadcast %cst_16 : f32 to vector<128x128xf32>
    %40 = arith.select %38, %39, %36 : vector<128x128xi1>, vector<128x128xf32>
    %c0_17 = arith.constant 0 : index
    %c0_18 = arith.constant 0 : index
    %41 = vector.load %arg4[%c0_17, %c0_18] : memref<384x128xf32, #tpu.memory_space<vmem>>, vector<128x128xf32>
    %cst_19 = arith.constant dense<0.000000e+00> : vector<128x128xf32>
    %42 = tpu.matmul %35, %41, %cst_19 {dimension_numbers = #tpu.dot_dimension_numbers<[1], [0], [0], [1], [0, 0, 1, 1], [], []>} : vector<128x128xf32>, vector<128x128xf32>, vector<128x128xf32> -> vector<128x128xf32>
    %c128_20 = arith.constant 128 : index
    %c0_21 = arith.constant 0 : index
    %43 = vector.load %arg4[%c128_20, %c0_21] : memref<384x128xf32, #tpu.memory_space<vmem>>, vector<128x128xf32>
    %cst_22 = arith.constant dense<0.000000e+00> : vector<128x128xf32>
    %44 = tpu.matmul %30, %43, %cst_22 {dimension_numbers = #tpu.dot_dimension_numbers<[1], [0], [0], [1], [0, 0, 1, 1], [], []>} : vector<128x128xf32>, vector<128x128xf32>, vector<128x128xf32> -> vector<128x128xf32>
    %45 = arith.addf %42, %44 : vector<128x128xf32>
    %c256_23 = arith.constant 256 : index
    %c0_24 = arith.constant 0 : index
    %46 = vector.load %arg4[%c256_23, %c0_24] : memref<384x128xf32, #tpu.memory_space<vmem>>, vector<128x128xf32>
    %cst_25 = arith.constant dense<0.000000e+00> : vector<128x128xf32>
    %47 = tpu.matmul %40, %46, %cst_25 {dimension_numbers = #tpu.dot_dimension_numbers<[1], [0], [0], [1], [0, 0, 1, 1], [], []>} : vector<128x128xf32>, vector<128x128xf32>, vector<128x128xf32> -> vector<128x128xf32>
    %48 = arith.addf %45, %47 : vector<128x128xf32>
    %c0_26 = arith.constant 0 : index
    %c0_27 = arith.constant 0 : index
    %49 = vector.load %arg5[%c0_26, %c0_27] : memref<1x128xf32, #tpu.memory_space<vmem>>, vector<1x128xf32>
    %50 = vector.broadcast %49 : vector<1x128xf32> to vector<128x128xf32>
    %51 = arith.addf %48, %50 : vector<128x128xf32>
    %52 = arith.addf %51, %1 : vector<128x128xf32>
    %cst_28 = arith.constant 0.000000e+00 : f32
    %53 = vector.broadcast %cst_28 : f32 to vector<128x128xf32>
    %54 = arith.maximumf %52, %53 : vector<128x128xf32>
    %55 = vector.shape_cast %54 : vector<128x128xf32> to vector<8x16x128xf32>
    %c0_29 = arith.constant 0 : index
    %c0_30 = arith.constant 0 : index
    %c0_31 = arith.constant 0 : index
    %56 = vector.load %arg6[%c0_29, %c0_30, %c0_31] : memref<8x16x128xf32, #tpu.memory_space<vmem>>, vector<8x16x128xf32>
    tpu.vector_store %arg6[%c0_29, %c0_30, %c0_31], %55 {strides = array<i32>} : memref<8x16x128xf32, #tpu.memory_space<vmem>>, vector<8x16x128xf32>,
    return
  }
  func.func @transform_0(%arg0: i32) -> (i32, i32, i32) {
    %c0_i32 = arith.constant 0 : i32
    %c0_i32_0 = arith.constant 0 : i32
    %c0_i32_1 = arith.constant 0 : i32
    return %arg0, %c0_i32, %c0_i32_0 : i32, i32, i32
  }
  func.func @transform_1(%arg0: i32) -> (i32, i32) {
    %c0_i32 = arith.constant 0 : i32
    %c0_i32_0 = arith.constant 0 : i32
    %c0_i32_1 = arith.constant 0 : i32
    return %c0_i32, %c0_i32_0 : i32, i32
  }
  func.func @transform_2(%arg0: i32) -> (i32, i32) {
    %c0_i32 = arith.constant 0 : i32
    %c0_i32_0 = arith.constant 0 : i32
    %c0_i32_1 = arith.constant 0 : i32
    return %c0_i32, %c0_i32_0 : i32, i32
  }
  func.func @transform_3(%arg0: i32) -> (i32, i32) {
    %c0_i32 = arith.constant 0 : i32
    %c0_i32_0 = arith.constant 0 : i32
    %c0_i32_1 = arith.constant 0 : i32
    return %c0_i32, %c0_i32_0 : i32, i32
  }
  func.func @transform_4(%arg0: i32) -> (i32, i32) {
    %c0_i32 = arith.constant 0 : i32
    %c0_i32_0 = arith.constant 0 : i32
    %c0_i32_1 = arith.constant 0 : i32
    return %c0_i32, %c0_i32_0 : i32, i32
  }
  func.func @transform_5(%arg0: i32) -> (i32, i32, i32) {
    %c0_i32 = arith.constant 0 : i32
    %c0_i32_0 = arith.constant 0 : i32
    %c0_i32_1 = arith.constant 0 : i32
    return %arg0, %c0_i32, %c0_i32_0 : i32, i32, i32
  }
}

</mosaic_0001>

<bundles_post_ra>
// kernel: tpu_custom_call.1
= control target key start
LH: loop header
LB: loop body
LE: loop exit
PB: predicated region body
PF: predicated region fallthrough
CT: control target
= control target key end

     0   :  { %10 = vsyncpa [#allocation3], 0  ;;  %s3583_s0 = inlined_call_operand.hbm [shape: f32[16,16,128], index: 0, kind: input, shape index: {}]   ;;  %s3584_s1 = inlined_call_operand.hbm [shape: f32[384,128], index: 1, kind: input, shape index: {}]   ;;  %s3585_s2 = inlined_call_operand.vmem [shape: f32[1,128], index: 2, kind: input, shape index: {}]   ;;  %s3586_s3 = inlined_call_operand.hbm [shape: f32[384,128], index: 3, kind: input, shape index: {}]   ;;  %s3587_s4 = inlined_call_operand.vmem [shape: f32[1,128], index: 4, kind: input, shape index: {}]   ;;  %s3588_s5 = inlined_call_operand.hbm [shape: f32[16,16,128], index: 5, kind: output, shape index: {}]  }
   0x1   :  { %12 = vsyncpa [#allocation3 + $0x1], 0 }
   0x2   :  { %13 = vsyncpa [#allocation6], 0 }
   0x3   :  { %14 = vsyncpa [#allocation4], 0 }
   0x4   :  { %16 = vsyncpa [#allocation4 + $0x1], 0  ;;  %s2859_s18 = smov 0   ;;  %s2861_s19 = smov 0  }
   0x5   :  { %s2863_s20 = smov 0   ;;  %s2865_s21 = smov 0  }
   0x6 LB: > { %s2880_s22 = sadd.s32 4294967295, %s2819_s21   ;;  %s1715_s23 = sadd.s32 4294967294, %s2819_s21   ;;  %s2819_s21 = sphi %s2865_s21, %s3608_s21   ;;  %s2815_s20 = sphi %s2863_s20, %s3607_s20   ;;  %s2811_s19 = sphi %s2861_s19, %s3606_s19   ;;  %s2807_s18 = sphi %s2859_s18, %s3605_s18  }
   0x7   : > { %p42_p0 = scmp.ne.s32.totalorder %s2811_s19, %s2807_s18  ;;  %p3589_p1 = scmp.eq.s32.totalorder %s2880_s22, 0 }
   0x8   : > { %p156_p3 = scmp.eq.s32.totalorder %s1715_s23, 1  ;;  %p1716_p5 = scmp.ge.s32.totalorder %s2819_s21, 1 }
   0x9   : > { %p2889_p4 = por %p3589_p1, %p42_p0  ;;  %p163_p7 = scmp.lt.s32.totalorder %s2819_s21, 3 }
   0xa   : > { %p2894_p6 = por %p156_p3, %p42_p0  ;;  %s2821_s27 = smov [#allocation5]  }
   0xb   : > { %s3592_s24 = scalar_select %p2889_p4, 1, 0 }
   0xc   : > { %s3593_s25 = scalar_select %p2894_p6, 1, 0 }
   0xd   : > { %p2899_p8 = pnand %p1716_p5, %p163_p7  ;;  %s175_s28 = sshll.u32 %s2821_s27, 4  ;;  %s2903_s28 = int_to_ptr.vmem [resolvable:$true] %s175_s28 }
   0xe   : > { %s2822_s30 = smov [#allocation7]   ;;  %s2663_s9 = scalar_lea.hbm %s3584_s1, 6144 }
   0xf   : > { %p2603_p9 = pneg %p2899_p8  ;;  %s191_s6 = sshll.u32 %s2822_s30, 4  ;;  %s2914_s6 = int_to_ptr.vmem [resolvable:$true] %s191_s6 }
  0x10   : > { %p2664_p12 = scmp.ne.s32.totalorder %s3584_s1, %s2663_s9  ;;  %p2670_p5 = scmp.lt.u32.totalorder %s2663_s9, %s3584_s1 }
  0x11   : > { %p2910_p11 = pnand %p2603_p9, %p3589_p1 }
  0x13   : > { %p2665_p13 = pneg %p2910_p11 }
  0x15   : > { %p2666_p0 = pnand %p2665_p13, %p2664_p12 }
  0x17   : > { %p2667_p3 = pneg %p2666_p0 }
  0x19   : > { %p2672_p7 = pnand %p2670_p5, %p2667_p3 }
  0x1b   : > { %2675 = shalt.err (!%p2672_p7)
}
  0x1c   : > { %s2676_s14 = scalar_lea.vmem %s2903_s28, 6144  ;;  %p2684_p2 = scmp.lt.s32.totalorder %s2903_s28, %s2903_s28 }
  0x1d   : > { %p2677_p9 = scmp.ne.s32.totalorder %s2903_s28, %s2676_s14  ;;  %p2685_p12 = scmp.lt.s32.totalorder %s2676_s14, %s2676_s14 }
  0x1f   : > { %p2679_p10 = pnand %p2677_p9, %p2665_p13  ;;  %p2686_p0 = por %p2685_p12, %p2684_p2 }
  0x21   : > { %p2680_p1 = pneg %p2679_p10 }
  0x23   : > { %p2687_p6 = pnand %p2686_p0, %p2680_p1 }
  0x25   : > { %2690 = shalt.err (!%p2687_p6)
}
  0x26   : > { %s2823_s15 = smov 128   ;;  %s2824_s16 = smov 8  }
  0x27   : > { %2606 = dma.hbm_to_vmem [thread:$0]  (!%p2910_p11), %s3584_s1, 6144, %s2903_s28, [#allocation6], %s2823_s15, %s2823_s15, %s2824_s16  }
  0x28   : > { %s2691_s7 = scalar_lea.hbm %s3586_s3, 6144 }
  0x29   : > { %p2692_p1 = scmp.ne.s32.totalorder %s3586_s3, %s2691_s7  ;;  %p2698_p10 = scmp.lt.u32.totalorder %s2691_s7, %s3586_s3 }
  0x2b   : > { %p2694_p2 = pnand %p2692_p1, %p2665_p13 }
  0x2d   : > { %p2695_p6 = pneg %p2694_p2 }
  0x2f   : > { %p2700_p3 = pnand %p2698_p10, %p2695_p6 }
  0x31   : > { %2703 = shalt.err (!%p2700_p3)
}
  0x32   : > { %s2704_s28 = scalar_lea.vmem %s2914_s6, 6144  ;;  %p2712_p12 = scmp.lt.s32.totalorder %s2914_s6, %s2914_s6 }
  0x33   : > { %p2705_p5 = scmp.ne.s32.totalorder %s2914_s6, %s2704_s28  ;;  %p2713_p0 = scmp.lt.s32.totalorder %s2704_s28, %s2704_s28 }
  0x35   : > { %p2707_p7 = pnand %p2705_p5, %p2665_p13  ;;  %p2714_p1 = por %p2713_p0, %p2712_p12 }
  0x37   : > { %p2708_p9 = pneg %p2707_p7 }
  0x39   : > { %p2715_p2 = pnand %p2714_p1, %p2708_p9 }
  0x3b   : > { %2718 = shalt.err (!%p2715_p2)
}
  0x3c   : > { %2609 = dma.hbm_to_vmem [thread:$0]  (!%p2910_p11), %s3586_s3, 6144, %s2914_s6, [#allocation6], %s2823_s15, %s2823_s15, %s2824_s16  }
  0x3d   : > { %s2975_s29 = sadd.s32 1, %s2819_s21   ;;  %s29_s14 = sadd.s32 1, %s2815_s20 }
  0x3e   : > { %s26_s17 = ssub.s32 %s2819_s21, %s2975_s29  ;;  %p36_p13 = scmp.ne.s32.totalorder %s2815_s20, %s2811_s19 }
  0x3f   : > { %p27_p6 = scmp.eq.s32.totalorder %s26_s17, 0  ;;  %p37_p10 = scmp.eq.s32.totalorder %s2819_s21, 0 }
  0x40   : > { %p3596_p3 = scmp.eq.s32.totalorder %s2880_s22, 1  ;;  %p2620_p7 = scmp.lt.s32.totalorder %s2819_s21, 2 }
  0x41   : > { %s2991_s27 = scalar_select %p27_p6, %s2815_s20, %s29_s14  }
  0x42   : > { %p2985_p5 = por %p3596_p3, %p36_p13  ;;  %p38_p9 = por %p37_p10, %p36_p13 }
  0x43   : > { %s208_s30 = sand.u32 1, %s2815_s20   ;;  %s1802_s6 = sshll.u32 %s2819_s21, 11 }
  0x44   : > { %s3597_s23 = scalar_select %p2985_p5, 1, 0 }
  0x45   : > { %s1720_s7 = sshll.u32 %s208_s30, 7  ;;  %s2998_s10 = scalar_lea.hbm %s3583_s0, %s1802_s6 }
  0x46   : > { %s212_s11 = scalar_lea.vmem [#allocation2], %s1720_s7  ;;  %p3002_p11 = pnand %p2620_p7, %p38_p9 }
  0x47   : > { %s220_s28 = sshll.u32 %s212_s11, 4  ;;  %s3006_s13 = scalar_lea.sflag [#allocation3], %s208_s30  ;;  %s3000_s28 = int_to_ptr.vmem [resolvable:$true] %s220_s28 }
  0x48   : > { %s2719_s14 = scalar_lea.hbm %s2998_s10, 2048  ;;  %p2721_p0 = pneg %p3002_p11 }
  0x49   : > { %p2720_p12 = scmp.ne.s32.totalorder %s2998_s10, %s2719_s14  ;;  %s2724_s6 = scalar_lea.hbm %s3583_s0, 4096 }
  0x4a   : > { %p2725_p13 = scmp.lt.u32.totalorder %s2998_s10, %s3583_s0  ;;  %p2726_p6 = scmp.lt.u32.totalorder %s2724_s6, %s2719_s14 }
  0x4b   : > { %p2722_p1 = pnand %p2721_p0, %p2720_p12  ;;  %p2728_p3 = scmp.lt.u32.totalorder %s2719_s14, %s2998_s10 }
  0x4c   : > { %p2727_p10 = por %p2726_p6, %p2725_p13 }
  0x4d   : > { %p2723_p2 = pneg %p2722_p1 }
  0x4e   : > { %p2729_p7 = por %p2728_p3, %p2727_p10 }
  0x50   : > { %p2730_p9 = pnand %p2729_p7, %p2723_p2 }
  0x52   : > { %2733 = shalt.err (!%p2730_p9)
}
  0x53   : > { %s2734_s30 = scalar_lea.vmem %s3000_s28, 2048  ;;  %s2825_s11 = smov [#allocation2]  }
  0x54   : > { %p2735_p12 = scmp.ne.s32.totalorder %s3000_s28, %s2734_s30  ;;  %s2739_s17 = sshll.u32 %s2825_s11, 4  ;;  %s2740_s17 = int_to_ptr.vmem [resolvable:$false] %s2739_s17 }
  0x55   : > { %s2741_s7 = scalar_lea.vmem %s2740_s17, 4096  ;;  %p2742_p4 = scmp.lt.s32.totalorder %s3000_s28, %s2740_s17 }
  0x56   : > { %p2737_p1 = pnand %p2735_p12, %p2721_p0  ;;  %p2743_p13 = scmp.lt.s32.totalorder %s2741_s7, %s2734_s30 }
  0x58   : > { %p2738_p5 = pneg %p2737_p1  ;;  %p2744_p6 = por %p2743_p13, %p2742_p4 }
  0x5a   : > { %p2745_p10 = pnand %p2744_p6, %p2738_p5 }
  0x5c   : > { %2748 = shalt.err (!%p2745_p10)
}
  0x5d   : > { %2613 = dma.hbm_to_vmem [thread:$0]  (!%p3002_p11), %s2998_s10, 2048, %s3000_s28, %s3006_s13, %s2823_s15, %s2823_s15, %s2824_s16  }
  0x5e   : > { %232 = sbr.rel (%p2899_p8) target bundleno = 748 (0x2ec), region = 40  ;;  %s3040_s14 = sand.u32 (!%p2899_p8), 1, %s2811_s19  }
  0x5f   : > { %s1725_s6 = sshll.u32 (!%p2899_p8), %s3040_s14, 7  ;;  %s235_s8 = scalar_lea.sflag (!%p2899_p8), [#allocation3], %s3040_s14 }
  0x60   : > { %s3046_s12 = scalar_lea.vmem (!%p2899_p8), [#allocation2], %s1725_s6  ;;  %p3599_p4 = scmp.ne.s32.totalorder (!%p2899_p8), %s3592_s24, 0 }
  0x65   : > { %2794 = dma.done.wait (%p3599_p4), %s235_s8, 2048  }
  0x66   : > { %2796 = vsyncadd (%p3599_p4), %s235_s8, 4294965248  ;;  %p3600_p5 = scmp.eq.s32.totalorder %s2880_s22, 0 }
  0x68   : > { %2798 = dma.done.wait (%p3600_p5), [#allocation6], 12288   ;;  %p3601_p8 = pmov %p3600_p5 }
  0x69   : > { %v420_v0 = vld [vmem:[#allocation5 + $0x80] sm:$0xff]  ;;  %v421_v1 = vld [vmem:[#allocation5 + $0x88] sm:$0xff]  ;;  %v422_v2 = vld [vmem:[#allocation5 + $0x90] sm:$0xff]  ;;  %s3488_s10 = scalar_lea.vmem [#allocation8], %s1725_s6  ;;  %s1804_s28 = sshll.u32 %s2880_s22, 11 }
  0x6a   : > { %2800 = vsyncadd (%p3601_p8), [#allocation6], 4294955008  ;;  %v2335_v3 = vpack.c.bf16 %v421_v1, %v420_v0  ;;  %v423_v4 = vld [vmem:[#allocation5 + $0x98] sm:$0xff]  ;;  %v424_v6 = vld [vmem:[#allocation5 + $0xa0] sm:$0xff]  ;;  %s1623_s13 = sshll.u32 %s3488_s10, 4  ;;  %s3535_s11 = scalar_lea.hbm %s3588_s5, %s1804_s28  ;;  %s3537_s13 = int_to_ptr.vmem [resolvable:$true] %s1623_s13 }
  0x6b   : > { %v2339_v5 = vpack.c.bf16 %v423_v4, %v422_v2  ;;  %v425_v7 = vld [vmem:[#allocation5 + $0xa8] sm:$0xff]  ;;  %v3057_v9 = vld [vmem:[%s3046_s12] sm:$0xff]  ;;  %v426_v10 = vld [vmem:[#allocation5 + $0xb0] sm:$0xff]  ;;  %s1609_s22 = scalar_lea.sflag [#allocation4], %s3040_s14  ;;  %s2749_s17 = scalar_lea.vmem %s3537_s13, 2048 }
  0x6c   : > { %2336 = vmatprep.subr.bf16.mxu0 %v2335_v3  ;;  %v2343_v8 = vpack.c.bf16 %v425_v7, %v424_v6  ;;  %v427_v11 = vld [vmem:[#allocation5 + $0xb8] sm:$0xff]  ;;  %2031 = vmatprep.mubr.f32.mxu0 %v3057_v9  ;;  %v428_v13 = vld [vmem:[#allocation5 + $0xc0] sm:$0xff]  ;;  %v429_v14 = vld [vmem:[#allocation5 + $0xc8] sm:$0xff]  ;;  %p2750_p11 = scmp.ne.s32.totalorder %s3537_s13, %s2749_s17  ;;  %p3602_p0 = scmp.ne.s32.totalorder %s3597_s23, 0 }
  0x6d   : > { %2338 = vmatpush3.bf16.msra.mxu0 %v2335_v3  ;;  %v2347_v12 = vpack.c.bf16 %v427_v11, %v426_v10  ;;  %v2351_v15 = vpack.c.bf16 %v429_v14, %v428_v13  ;;  %v430_v16 = vld [vmem:[#allocation5 + $0xd0] sm:$0xff]  ;;  %v431_v17 = vld [vmem:[#allocation5 + $0xd8] sm:$0xff]  ;;  %v432_v19 = vld [vmem:[#allocation5 + $0xe0] sm:$0xff]  ;;  %v291_v13 = vlaneseq  ;;  %s2826_s7 = smov [#allocation8]  }
  0x6e   : > { %2340 = vmatprep.subr.bf16.mxu0 %v2339_v5  ;;  %v2355_v18 = vpack.c.bf16 %v431_v17, %v430_v16  ;;  %v433_v20 = vld [vmem:[#allocation5 + $0xe8] sm:$0xff]  ;;  %v434_v22 = vld [vmem:[#allocation5 + $0xf0] sm:$0xff]  ;;  %v435_v23 = vld [vmem:[#allocation5 + $0xf8] sm:$0xff]  ;;  %p2751_p2 = pnand %p2750_p11, %p3602_p0  ;;  %s2753_s6 = sshll.u32 %s2826_s7, 4  ;;  %s2754_s6 = int_to_ptr.vmem [resolvable:$false] %s2753_s6 }
  0x6f   : > { %v2359_v21 = vpack.c.bf16 %v433_v20, %v432_v19  ;;  %v1054_v24 = vld [vmem:[#allocation7 + $0x80] sm:$0xff]  ;;  %v1055_v25 = vld [vmem:[#allocation7 + $0x88] sm:$0xff]  ;;  %v1056_v26 = vld [vmem:[#allocation7 + $0x90] sm:$0xff]  ;;  %v2363_v28 = vpack.c.bf16 %v435_v23, %v434_v22  ;;  %v3109_v20 = vshrl.u32 %v291_v13, 7  ;;  %v298_v22 = vrot.slane %v3057_v9, 7  ;;  %s2755_s8 = scalar_lea.vmem %s2754_s6, 4096  ;;  %p2756_p7 = scmp.lt.s32.totalorder %s3537_s13, %s2754_s6 }
  0x70   : > { %v1057_v27 = vld [vmem:[#allocation7 + $0x98] sm:$0xff]  ;;  %v404_v29 = vld [vmem:[#allocation5] sm:$0xff]  ;;  %v2431_v30 = vpack.c.bf16 %v1055_v25, %v1054_v24  ;;  %v405_v31 = vld [vmem:[#allocation5 + $0x8] sm:$0xff]  ;;  %p2752_p3 = pneg %p2751_p2  ;;  %p2757_p9 = scmp.lt.s32.totalorder %s2755_s8, %s2749_s17 }
  0x71   : > { %2342 = vmatpush3.bf16.msra.mxu0 %v2339_v5  ;;  %v2435_v32 = vpack.c.bf16 %v1057_v27, %v1056_v26  ;;  %v1058_v33 = vld [vmem:[#allocation7 + $0xa0] sm:$0xff]  ;;  %v1059_v34 = vld [vmem:[#allocation7 + $0xa8] sm:$0xff]  ;;  %v2367_v35 = vpack.c.bf16 %v405_v31, %v404_v29  ;;  %v406_v37 = vld [vmem:[#allocation5 + $0x10] sm:$0xff]  ;;  %vm314_vm0 = vcmp.lt.s32.totalorder %v3109_v20, 1  ;;  %vm1805_vm1 = vcmp.ne.s32.totalorder %v3109_v20, 0 }
  0x72   : > { %2344 = vmatprep.subr.bf16.mxu0 %v2343_v8  ;;  %2432 = vmatprep.subr.bf16.mxu1 %v2431_v30  ;;  %v2439_v36 = vpack.c.bf16 %v1059_v34, %v1058_v33  ;;  %v407_v38 = vld [vmem:[#allocation5 + $0x18] sm:$0xff]  ;;  %v1060_v39 = vld [vmem:[#allocation7 + $0xb0] sm:$0xff]  ;;  %v3061_v41 = vld [vmem:[%s3046_s12 + $0x8] sm:$0xff]  ;;  %vm367_vm2 = vcmp.lt.s32.totalorder %v3109_v20, 7  ;;  %p2758_p12 = por %p2757_p9, %p2756_p7 }
  0x73   : > { %2434 = vmatpush3.bf16.msra.mxu1 %v2431_v30  ;;  %v1061_v40 = vld [vmem:[#allocation7 + $0xb8] sm:$0xff]  ;;  %v3064_v42 = vld [vmem:[%s3046_s12 + $0x10] sm:$0xff]  ;;  %v2371_v43 = vpack.c.bf16 %v407_v38, %v406_v37  ;;  %v408_v44 = vld [vmem:[#allocation5 + $0x20] sm:$0xff] }
  0x74   : > { %2436 = vmatprep.subr.bf16.mxu1 %v2435_v32  ;;  %v409_v45 = vld [vmem:[#allocation5 + $0x28] sm:$0xff]  ;;  %v2443_v46 = vpack.c.bf16 %v1061_v40, %v1060_v39  ;;  %v1062_v47 = vld [vmem:[#allocation7 + $0xc0] sm:$0xff]  ;;  %v3069_v49 = vld [vmem:[%s3046_s12 + $0x18] sm:$0xff]  ;;  %v300_v29 = vrot.slane %v3064_v42, 7  ;;  %p2759_p1 = pnand %p2758_p12, %p2752_p3 }
  0x75   : > { %2346 = vmatpush3.bf16.msra.mxu0 %v2343_v8  ;;  %v1063_v48 = vld [vmem:[#allocation7 + $0xc8] sm:$0xff]  ;;  %v3072_v50 = vld [vmem:[%s3046_s12 + $0x20] sm:$0xff]  ;;  %v2375_v51 = vpack.c.bf16 %v409_v45, %v408_v44  ;;  %v410_v52 = vld [vmem:[#allocation5 + $0x30] sm:$0xff] }
  0x76   : > { %2348 = vmatprep.subr.bf16.mxu0 %v2347_v12  ;;  %v411_v53 = vld [vmem:[#allocation5 + $0x38] sm:$0xff]  ;;  %v2447_v54 = vpack.c.bf16 %v1063_v48, %v1062_v47  ;;  %v1064_v55 = vld [vmem:[#allocation7 + $0xd0] sm:$0xff]  ;;  %v3077_v57 = vld [vmem:[%s3046_s12 + $0x28] sm:$0xff] }
  0x77   : > { %2438 = vmatpush3.bf16.msra.mxu1 %v2435_v32  ;;  %v1065_v56 = vld [vmem:[#allocation7 + $0xd8] sm:$0xff]  ;;  %v3080_v58 = vld [vmem:[%s3046_s12 + $0x30] sm:$0xff]  ;;  %v2379_v59 = vpack.c.bf16 %v411_v53, %v410_v52  ;;  %v412_v60 = vld [vmem:[#allocation5 + $0x40] sm:$0xff]  ;;  %v303_v44 = vrot.slane %v3077_v57, 7 }
  0x78   : > { %2440 = vmatprep.subr.bf16.mxu1 %v2439_v36  ;;  %v413_v61 = vld [vmem:[#allocation5 + $0x48] sm:$0xff]  ;;  %v2451_v62 = vpack.c.bf16 %v1065_v56, %v1064_v55  ;;  %v1066_v63 = vld [vmem:[#allocation7 + $0xe0] sm:$0xff]  ;;  %v3085_v1 = vld [vmem:[%s3046_s12 + $0x38] sm:$0xff]  ;;  %v304_v45 = vrot.slane %v3080_v58, 7 }
  0x79   : > { %2350 = vmatpush3.bf16.msra.mxu0 %v2347_v12  ;;  %v1067_v0 = vld [vmem:[#allocation7 + $0xe8] sm:$0xff]  ;;  %v3088_v2 = vld [vmem:[%s3046_s12 + $0x40] sm:$0xff]  ;;  %v2383_v3 = vpack.c.bf16 %v413_v61, %v412_v60  ;;  %v414_v4 = vld [vmem:[#allocation5 + $0x50] sm:$0xff]  ;;  %v305_v53 = vrot.slane %v3085_v1, 7 }
  0x7a   : > { %2352 = vmatprep.subr.bf16.mxu0 %v2351_v15  ;;  %v415_v5 = vld [vmem:[#allocation5 + $0x58] sm:$0xff]  ;;  %v2455_v6 = vpack.c.bf16 %v1067_v0, %v1066_v63  ;;  %v3093_v7 = vld [vmem:[%s3046_s12 + $0x48] sm:$0xff]  ;;  %v3096_v8 = vld [vmem:[%s3046_s12 + $0x50] sm:$0xff]  ;;  %v324_v55 = vsel %vm314_vm0, %v303_v44, %v304_v45 }
  0x7b   : > { %2442 = vmatpush3.bf16.msra.mxu1 %v2439_v36  ;;  %v2387_v10 = vpack.c.bf16 %v415_v5, %v414_v4  ;;  %v416_v11 = vld [vmem:[#allocation5 + $0x60] sm:$0xff]  ;;  %v417_v12 = vld [vmem:[#allocation5 + $0x68] sm:$0xff]  ;;  %v3101_v14 = vld [vmem:[%s3046_s12 + $0x58] sm:$0xff]  ;;  %v302_v36 = vrot.slane %v3072_v50, 7  ;;  %v323_v61 = vsel %vm314_vm0, %v304_v45, %v305_v53  ;;  %v308_v63 = vrot.slane %v3096_v8, 7 }
  0x7c   : > { %2444 = vmatprep.subr.bf16.mxu1 %v2443_v46  ;;  %v2391_v16 = vpack.c.bf16 %v417_v12, %v416_v11  ;;  %v3107_v17 = vld [vmem:[%s3046_s12 + $0x78] sm:$0xff]  ;;  %v3118_v23 = vld [vmem:[%s3046_s12 + $0x70] sm:$0xff]  ;;  %v726_v26 = vld [vmem:[#allocation5 + $0x100] sm:$0xff] }
  0x7d   : > { %2354 = vmatpush3.bf16.msra.mxu0 %v2351_v15  ;;  %v3104_v15 = vld [vmem:[%s3046_s12 + $0x60] sm:$0xff]  ;;  %v419_v19 = vld [vmem:[#allocation5 + $0x78] sm:$0xff]  ;;  %v313_v24 = vrot.slane %v3107_v17, 7  ;;  %v727_v27 = vld [vmem:[#allocation5 + $0x108] sm:$0xff]  ;;  %v325_v52 = vsel %vm314_vm0, %v302_v36, %v303_v44  ;;  %v357_v44 = vrot.slane %v3080_v58, 1 }
  0x7e   : > { %2356 = vmatprep.subr.bf16.mxu0 %v2355_v18  ;;  %v2399_v31 = vpack.c.bf16 %v727_v27, %v726_v26  ;;  %v728_v32 = vld [vmem:[#allocation5 + $0x110] sm:$0xff]  ;;  %v729_v33 = vld [vmem:[#allocation5 + $0x118] sm:$0xff]  ;;  %v730_v39 = vld [vmem:[#allocation5 + $0x120] sm:$0xff]  ;;  %v310_v11 = vrot.slane %v3104_v15, 7 }
  0x7f   : > { %2446 = vmatpush3.bf16.msra.mxu1 %v2443_v46  ;;  %v330_v30 = vsel %vm314_vm0, %v313_v24, %v298_v22  ;;  %v2403_v38 = vpack.c.bf16 %v729_v33, %v728_v32  ;;  %v731_v40 = vld [vmem:[#allocation5 + $0x128] sm:$0xff]  ;;  %v732_v48 = vld [vmem:[#allocation5 + $0x130] sm:$0xff]  ;;  %v737_v5 = vld [vmem:[#allocation5 + $0x158] sm:$0xff]  ;;  %v351_v33 = vrot.slane %v3057_v9, 1 }
  0x80   : > { %2448 = vmatprep.subr.bf16.mxu1 %v2447_v54  ;;  %v2407_v47 = vpack.c.bf16 %v731_v40, %v730_v39  ;;  %v735_v60 = vld [vmem:[#allocation5 + $0x148] sm:$0xff]  ;;  %v736_v4 = vld [vmem:[#allocation5 + $0x150] sm:$0xff]  ;;  %v355_v39 = vrot.slane %v3072_v50, 1 }
  0x81   : > { %2358 = vmatpush3.bf16.msra.mxu0 %v2355_v18  ;;  %v418_v18 = vld [vmem:[#allocation5 + $0x70] sm:$0xff]  ;;  %v2419_v13 = vpack.c.bf16 %v737_v5, %v736_v4  ;;  %v366_v5 = vrot.slane %v3107_v17, 1 }
  0x82   : > { %2360 = vmatprep.subr.bf16.mxu0 %v2359_v21  ;;  %v2395_v25 = vpack.c.bf16 %v419_v19, %v418_v18  ;;  %v739_v18 = vld [vmem:[#allocation5 + $0x168] sm:$0xff] }
  0x83   : > { %2450 = vmatpush3.bf16.msra.mxu1 %v2447_v54  ;;  %v306_v54 = vrot.slane %v3088_v2, 7 }
  0x84   : > { %2452 = vmatprep.subr.bf16.mxu1 %v2451_v62 }
  0x85   : > { %2362 = vmatpush3.bf16.msra.mxu0 %v2359_v21  ;;  %v3114_v21 = vld [vmem:[%s3046_s12 + $0x68] sm:$0xff]  ;;  %v322_v0 = vsel %vm314_vm0, %v305_v53, %v306_v54  ;;  %v360_v53 = vrot.slane %v3093_v7, 1 }
  0x86   : > { %2364 = vmatprep.subr.bf16.mxu0 %v2363_v28 }
  0x87   : > { %2454 = vmatpush3.bf16.msra.mxu1 %v2451_v62  ;;  %v307_v62 = vrot.slane %v3093_v7, 7 }
  0x88   : > { %2456 = vmatprep.subr.bf16.mxu1 %v2455_v6 }
  0x89   : > { %2366 = vmatpush3.bf16.msra.mxu0 %v2363_v28  ;;  %v299_v28 = vrot.slane %v3061_v41, 7  ;;  %v320_v12 = vsel %vm314_vm0, %v307_v62, %v308_v63 }
  0x8a   : > { %2368 = vmatprep.subr.bf16.mxu0 %v2367_v35 }
  0x8b   : > { %2458 = vmatpush3.bf16.msra.mxu1 %v2455_v6  ;;  %v329_v34 = vsel %vm314_vm0, %v298_v22, %v299_v28  ;;  %v328_v37 = vsel %vm314_vm0, %v299_v28, %v300_v29  ;;  %v321_v6 = vsel %vm314_vm0, %v306_v54, %v307_v62  ;;  %v311_v22 = vrot.slane %v3114_v21, 7  ;;  %v740_v28 = vld [vmem:[#allocation5 + $0x170] sm:$0xff] }
  0x8c   : > { %2032 = vmatmul.mubr.f32.vlgmr.msra.gmra.mrb[0].mxu0 %v3061_v41  ;;  %v361_v54 = vrot.slane %v3096_v8, 1 }
  0x8d   : > { %2370 = vmatpush3.bf16.msra.mxu0 %v2367_v35  ;;  %2034 = vmatprep.mubr.f32.mxu0 %v3064_v42  ;;  %v301_v35 = vrot.slane %v3069_v49, 7 }
  0x8e   : > { %2372 = vmatprep.subr.bf16.mxu0 %v2371_v43 }
  0x8f   : > { %v326_v46 = vsel %vm314_vm0, %v301_v35, %v302_v36 }
  0x90   : > { %2035 = vmatmul.mubr.f32.gmra.mrb[2].mxu0 %v3069_v49 }
  0x91   : > { %2374 = vmatpush3.bf16.msra.mxu0 %v2371_v43  ;;  %2037 = vmatprep.mubr.f32.mxu0 %v3072_v50  ;;  %v327_v43 = vsel %vm314_vm0, %v300_v29, %v301_v35  ;;  %v741_v29 = vld [vmem:[#allocation5 + $0x178] sm:$0xff]  ;;  %v353_v35 = vrot.slane %v3064_v42, 1 }
  0x92   : > { %2376 = vmatprep.subr.bf16.mxu0 %v2375_v51  ;;  %v2427_v32 = vpack.c.bf16 %v741_v29, %v740_v28 }
  0x94   : > { %2038 = vmatmul.mubr.f32.gmra.mrb[4].mxu0 %v3077_v57 }
  0x95   : > { %2378 = vmatpush3.bf16.msra.mxu0 %v2375_v51  ;;  %2040 = vmatprep.mubr.f32.mxu0 %v3080_v58  ;;  %v733_v51 = vld [vmem:[#allocation5 + $0x138] sm:$0xff] }
  0x96   : > { %2380 = vmatprep.subr.bf16.mxu0 %v2379_v59  ;;  %v2411_v56 = vpack.c.bf16 %v733_v51, %v732_v48  ;;  %v359_v48 = vrot.slane %v3088_v2, 1 }
  0x98   : > { %2041 = vmatmul.mubr.f32.gmra.mrb[6].mxu0 %v3085_v1 }
  0x99   : > { %2382 = vmatpush3.bf16.msra.mxu0 %v2379_v59  ;;  %2043 = vmatprep.mubr.f32.mxu0 %v3088_v2  ;;  %v734_v59 = vld [vmem:[#allocation5 + $0x140] sm:$0xff] }
  0x9a   : > { %2384 = vmatprep.subr.bf16.mxu0 %v2383_v3 }
  0x9c   : > { %2044 = vmatmul.mubr.f32.gmra.mrb[8].mxu0 %v3093_v7 }
  0x9d   : > { %2386 = vmatpush3.bf16.msra.mxu0 %v2383_v3  ;;  %2046 = vmatprep.mubr.f32.mxu0 %v3096_v8  ;;  %v2415_v3 = vpack.c.bf16 %v735_v60, %v734_v59  ;;  %v362_v59 = vrot.slane %v3101_v14, 1  ;;  %v363_v60 = vrot.slane %v3104_v15, 1 }
  0x9e   : > { %2388 = vmatprep.subr.bf16.mxu0 %v2387_v10 }
  0x9f   : > { %v372_v62 = vsel %vm367_vm2, %v361_v54, %v362_v59 }
  0xa0   : > { %2047 = vmatmul.mubr.f32.gmra.mrb[10].mxu0 %v3101_v14 }
  0xa1   : > { %2390 = vmatpush3.bf16.msra.mxu0 %v2387_v10  ;;  %2049 = vmatprep.mubr.f32.mxu0 %v3104_v15  ;;  %v309_v10 = vrot.slane %v3101_v14, 7 }
  0xa2   : > { %2392 = vmatprep.subr.bf16.mxu0 %v2391_v16 }
  0xa3   : > { %v319_v19 = vsel %vm314_vm0, %v308_v63, %v309_v10  ;;  %v318_v26 = vsel %vm314_vm0, %v309_v10, %v310_v11  ;;  %v364_v63 = vrot.slane %v3114_v21, 1 }
  0xa4   : > { %2050 = vmatmul.mubr.f32.gmra.mrb[12].mxu0 %v3114_v21 }
  0xa5   : > { %2394 = vmatpush3.bf16.msra.mxu0 %v2391_v16  ;;  %2052 = vmatprep.mubr.f32.mxu0 %v3118_v23  ;;  %v738_v16 = vld [vmem:[#allocation5 + $0x160] sm:$0xff]  ;;  %v370_v4 = vsel %vm367_vm2, %v363_v60, %v364_v63 }
  0xa6   : > { %2396 = vmatprep.subr.bf16.mxu0 %v2395_v25  ;;  %v2423_v27 = vpack.c.bf16 %v739_v18, %v738_v16  ;;  %v1038_v18 = vld [vmem:[#allocation7] sm:$0xff] }
  0xa8   : > { %2053 = vmatmul.mubr.f32.gmra.mrb[14].mxu0 %v3107_v17 }
  0xa9   : > { %2398 = vmatpush3.bf16.msra.mxu0 %v2395_v25  ;;  %2087 = vmatprep.mubr.msk.f32.mxu0 %vm1805_vm1, %v330_v30  ;;  %v312_v25 = vrot.slane %v3118_v23, 7  ;;  %v317_v30 = vsel %vm314_vm0, %v310_v11, %v311_v22  ;;  %v383_v11 = vsel %vm367_vm2, %v366_v5, %v351_v33 }
  0xaa   : > { %2400 = vmatprep.subr.bf16.mxu0 %v2399_v31 }
  0xab   : > { %v315_v36 = vsel %vm314_vm0, %v312_v25, %v313_v24 }
  0xac   : > { %2088 = vmatmul.mubr.f32.vlgmr.msra.gmra.mrb[0].mxu0 %v329_v34  ;;  %v352_v34 = vrot.slane %v3061_v41, 1 }
  0xad   : > { %2402 = vmatpush3.bf16.msra.mxu0 %v2399_v31  ;;  %2090 = vmatprep.mubr.msk.f32.mxu0 %vm1805_vm1, %v328_v37  ;;  %v316_v31 = vsel %vm314_vm0, %v311_v22, %v312_v25  ;;  %v3197_v37 = vadd.s32 8, %v3109_v20  ;;  %v3264_v25 = vld [vmem:[%s3585_s2] ss:$0 sm:$0xff] }
  0xae   : > { %2404 = vmatprep.subr.bf16.mxu0 %v2403_v38  ;;  %v382_v9 = vsel %vm367_vm2, %v351_v33, %v352_v34  ;;  %v381_v40 = vsel %vm367_vm2, %v352_v34, %v353_v35  ;;  %v3478_v20 = vld [vmem:[%s3587_s4] ss:$0 sm:$0xff] }
  0xaf   : > { %vm1806_vm3 = vcmp.ne.s32.totalorder %v3197_v37, 15 }
  0xb0   : > { %2091 = vmatmul.mubr.f32.gmra.mrb[2].mxu0 %v327_v43  ;;  %v356_v43 = vrot.slane %v3077_v57, 1 }
  0xb1   : > { %2406 = vmatpush3.bf16.msra.mxu0 %v2403_v38  ;;  %2093 = vmatprep.mubr.msk.f32.mxu0 %vm1805_vm1, %v326_v46  ;;  %v354_v38 = vrot.slane %v3069_v49, 1 }
  0xb2   : > { %2408 = vmatprep.subr.bf16.mxu0 %v2407_v47  ;;  %v378_v46 = vsel %vm367_vm2, %v355_v39, %v356_v43  ;;  %v377_v51 = vsel %vm367_vm2, %v356_v43, %v357_v44 }
  0xb3   : > { %v380_v24 = vsel %vm367_vm2, %v353_v35, %v354_v38  ;;  %v379_v45 = vsel %vm367_vm2, %v354_v38, %v355_v39 }
  0xb4   : > { %2094 = vmatmul.mubr.f32.gmra.mrb[4].mxu0 %v325_v52 }
  0xb5   : > { %2410 = vmatpush3.bf16.msra.mxu0 %v2407_v47  ;;  %2096 = vmatprep.mubr.msk.f32.mxu0 %vm1805_vm1, %v324_v55  ;;  %v358_v47 = vrot.slane %v3085_v1, 1 }
  0xb6   : > { %2412 = vmatprep.subr.bf16.mxu0 %v2411_v56 }
  0xb7   : > { %v376_v52 = vsel %vm367_vm2, %v357_v44, %v358_v47  ;;  %v375_v55 = vsel %vm367_vm2, %v358_v47, %v359_v48  ;;  %v1042_v44 = vld [vmem:[#allocation7 + $0x20] sm:$0xff] }
  0xb8   : > { %2097 = vmatmul.mubr.f32.gmra.mrb[6].mxu0 %v323_v61  ;;  %v373_v61 = vsel %vm367_vm2, %v360_v53, %v361_v54 }
  0xb9   : > { %2414 = vmatpush3.bf16.msra.mxu0 %v2411_v56  ;;  %2099 = vmatprep.mubr.msk.f32.mxu0 %vm1805_vm1, %v322_v0  ;;  %v374_v56 = vsel %vm367_vm2, %v359_v48, %v360_v53  ;;  %v365_v0 = vrot.slane %v3118_v23, 1 }
  0xba   : > { %2416 = vmatprep.subr.bf16.mxu0 %v2415_v3 }
  0xbb   : > { %v368_v10 = vsel %vm367_vm2, %v365_v0, %v366_v5 }
  0xbc   : > { %2100 = vmatmul.mubr.f32.gmra.mrb[8].mxu0 %v321_v6  ;;  %v369_v6 = vsel %vm367_vm2, %v364_v63, %v365_v0 }
  0xbd   : > { %2418 = vmatpush3.bf16.msra.mxu0 %v2415_v3  ;;  %2102 = vmatprep.mubr.msk.f32.mxu0 %vm1805_vm1, %v320_v12  ;;  %v371_v3 = vsel %vm367_vm2, %v362_v59, %v363_v60  ;;  %v1068_v12 = vld [vmem:[#allocation7 + $0xf0] sm:$0xff] }
  0xbe   : > { %2420 = vmatprep.subr.bf16.mxu0 %v2419_v13 }
  0xc0   : > { %2103 = vmatmul.mubr.f32.gmra.mrb[10].mxu0 %v319_v19  ;;  %v1039_v19 = vld [vmem:[#allocation7 + $0x8] sm:$0xff] }
  0xc1   : > { %2422 = vmatpush3.bf16.msra.mxu0 %v2419_v13  ;;  %2105 = vmatprep.mubr.msk.f32.mxu0 %vm1805_vm1, %v318_v26  ;;  %v1069_v13 = vld [vmem:[#allocation7 + $0xf8] sm:$0xff]  ;;  %v2463_v22 = vpack.c.bf16 %v1039_v19, %v1038_v18 }
  0xc2   : > { %2424 = vmatprep.subr.bf16.mxu0 %v2423_v27  ;;  %v2459_v16 = vpack.c.bf16 %v1069_v13, %v1068_v12 }
  0xc4   : > { %2106 = vmatmul.mubr.f32.gmra.mrb[12].mxu0 %v317_v30  ;;  %2460 = vmatprep.subr.bf16.mxu1 %v2459_v16  ;;  %v1040_v30 = vld [vmem:[#allocation7 + $0x10] sm:$0xff] }
  0xc5   : > { %2426 = vmatpush3.bf16.msra.mxu0 %v2423_v27  ;;  %2108 = vmatprep.mubr.msk.f32.mxu0 %vm1805_vm1, %v316_v31  ;;  %v1041_v31 = vld [vmem:[#allocation7 + $0x18] sm:$0xff] }
  0xc6   : > { %2428 = vmatprep.subr.bf16.mxu0 %v2427_v32  ;;  %2462 = vmatpush3.bf16.msra.mxu1 %v2459_v16  ;;  %v2467_v39 = vpack.c.bf16 %v1041_v31, %v1040_v30 }
  0xc7   : > { %2464 = vmatprep.subr.bf16.mxu1 %v2463_v22 }
  0xc8   : > { %2109 = vmatmul.mubr.f32.gmra.mrb[14].mxu0 %v315_v36 }
  0xc9   : > { %2430 = vmatpush3.bf16.msra.mxu0 %v2427_v32  ;;  %2143 = vmatprep.mubr.f32.mxu0 %v382_v9 }
  0xcc   : > { %2144 = vmatmul.mubr.msk.f32.vlgmr.msra.gmra.mrb[0].mxu0 %vm1806_vm3, %v381_v40 }
  0xcd   : > { %2146 = vmatprep.mubr.f32.mxu0 %v380_v24 }
  0xd0   : > { %2147 = vmatmul.mubr.msk.f32.gmra.mrb[2].mxu0 %vm1806_vm3, %v379_v45  ;;  %v1043_v45 = vld [vmem:[#allocation7 + $0x28] sm:$0xff] }
  0xd1   : > { %2149 = vmatprep.mubr.f32.mxu0 %v378_v46 }
  0xd4   : > { %2150 = vmatmul.mubr.msk.f32.gmra.mrb[4].mxu0 %vm1806_vm3, %v377_v51  ;;  %v1044_v51 = vld [vmem:[#allocation7 + $0x30] sm:$0xff] }
  0xd5   : > { %2152 = vmatprep.mubr.f32.mxu0 %v376_v52  ;;  %v1045_v52 = vld [vmem:[#allocation7 + $0x38] sm:$0xff] }
  0xd8   : > { %2153 = vmatmul.mubr.msk.f32.gmra.mrb[6].mxu0 %vm1806_vm3, %v375_v55 }
  0xd9   : > { %2155 = vmatprep.mubr.f32.mxu0 %v374_v56 }
  0xdc   : > { %2156 = vmatmul.mubr.msk.f32.gmra.mrb[8].mxu0 %vm1806_vm3, %v373_v61  ;;  %v2471_v61 = vpack.c.bf16 %v1043_v45, %v1042_v44 }
  0xdd   : > { %2158 = vmatprep.mubr.f32.mxu0 %v372_v62 }
  0xe0   : > { %2159 = vmatmul.mubr.msk.f32.gmra.mrb[10].mxu0 %vm1806_vm3, %v371_v3 }
  0xe1   : > { %2161 = vmatprep.mubr.f32.mxu0 %v370_v4  ;;  %v2475_v4 = vpack.c.bf16 %v1045_v52, %v1044_v51 }
  0xe4   : > { %2162 = vmatmul.mubr.msk.f32.gmra.mrb[12].mxu0 %vm1806_vm3, %v369_v6 }
  0xe5   : > { %2164 = vmatprep.mubr.f32.mxu0 %v368_v10  ;;  %v1046_v10 = vld [vmem:[#allocation7 + $0x40] sm:$0xff] }
  0xe8   : > { %2165 = vmatmul.mubr.msk.f32.gmra.mrb[14].mxu0 %vm1806_vm3, %v383_v11  ;;  %v1047_v11 = vld [vmem:[#allocation7 + $0x48] sm:$0xff] }
 0x19f   : > { %v2145_v26 = vpop.f32.mrb[0].mxu0 }
 0x1a0   : > { %v911_v27 = vadd.f32 %v2145_v26, %v3264_v25  ;;  %v808_v28 = vpop.f32.mrb[1].mxu0 }
 0x1a1   : > { %v910_v29 = vadd.f32 %v3264_v25, %v808_v28 }
 0x1a2   : > { %v927_v32 = vmax.f32 %v911_v27, 0.0 }
 0x1a3   : > { %v3268_v33 = vmax.f32 %v910_v29, 0.0  ;;  %v2148_v34 = vpop.f32.mrb[2].mxu0 }
 0x1a4   : > { %v943_v35 = vrot.slane %v927_v32, 7  ;;  %v991_v36 = vrot.slane %v927_v32, 1  ;;  %v913_v9 = vadd.f32 %v2148_v34, %v3264_v25  ;;  %v818_v38 = vpop.f32.mrb[3].mxu0 }
 0x1a5   : > { %v942_v40 = vrot.slane %v3268_v33, 7  ;;  %v990_v24 = vrot.slane %v3268_v33, 1  ;;  %v912_v43 = vadd.f32 %v3264_v25, %v818_v38  ;;  %2199 = vmatprep.mubr.f32.mxu1 %v3268_v33 }
 0x1a6   : > { %v929_v46 = vmax.f32 %v913_v9, 0.0  ;;  %2200 = vmatmul.mubr.f32.vlgmr.msra.gmra.mrb[0].mxu1 %v927_v32  ;;  %v2479_v32 = vpack.c.bf16 %v1047_v11, %v1046_v10  ;;  %v1049_v9 = vld [vmem:[#allocation7 + $0x58] sm:$0xff] }
 0x1a7   : > { %v928_v47 = vmax.f32 %v912_v43, 0.0  ;;  %v2151_v48 = vpop.f32.mrb[4].mxu0  ;;  %2466 = vmatpush3.bf16.msra.mxu1 %v2463_v22  ;;  %v3279_v53 = vsel %vm314_vm0, %v942_v40, %v943_v35  ;;  %v3285_v54 = vsel %vm367_vm2, %v990_v24, %v991_v36 }
 0x1a8   : > { %v945_v55 = vrot.slane %v929_v46, 7  ;;  %v993_v56 = vrot.slane %v929_v46, 1  ;;  %v915_v59 = vadd.f32 %v2151_v48, %v3264_v25  ;;  %v828_v60 = vpop.f32.mrb[5].mxu0  ;;  %2468 = vmatprep.subr.bf16.mxu1 %v2467_v39 }
 0x1a9   : > { %v944_v62 = vrot.slane %v928_v47, 7  ;;  %v992_v63 = vrot.slane %v928_v47, 1  ;;  %v914_v0 = vadd.f32 %v3264_v25, %v828_v60  ;;  %2202 = vmatprep.mubr.f32.mxu1 %v928_v47 }
 0x1aa   : > { %v931_v3 = vmax.f32 %v915_v59, 0.0  ;;  %2203 = vmatmul.mubr.f32.gmra.mrb[2].mxu1 %v929_v46 }
 0x1ab   : > { %v930_v5 = vmax.f32 %v914_v0, 0.0  ;;  %v2154_v6 = vpop.f32.mrb[6].mxu0  ;;  %2470 = vmatpush3.bf16.msra.mxu1 %v2467_v39  ;;  %v3291_v12 = vsel %vm314_vm0, %v943_v35, %v944_v62  ;;  %v3295_v13 = vsel %vm314_vm0, %v944_v62, %v945_v55  ;;  %v3299_v16 = vsel %vm367_vm2, %v991_v36, %v992_v63  ;;  %v1048_v36 = vld [vmem:[#allocation7 + $0x50] sm:$0xff]  ;;  %v1050_v62 = vld [vmem:[#allocation7 + $0x60] sm:$0xff] }
 0x1ac   : > { %v947_v18 = vrot.slane %v931_v3, 7  ;;  %v995_v19 = vrot.slane %v931_v3, 1  ;;  %v917_v22 = vadd.f32 %v2154_v6, %v3264_v25  ;;  %v838_v26 = vpop.f32.mrb[7].mxu0  ;;  %2472 = vmatprep.subr.bf16.mxu1 %v2471_v61  ;;  %v3304_v27 = vsel %vm367_vm2, %v992_v63, %v993_v56  ;;  %v1051_v63 = vld [vmem:[#allocation7 + $0x68] sm:$0xff] }
 0x1ad   : > { %v946_v28 = vrot.slane %v930_v5, 7  ;;  %v994_v29 = vrot.slane %v930_v5, 1  ;;  %v916_v30 = vadd.f32 %v3264_v25, %v838_v26  ;;  %2205 = vmatprep.mubr.f32.mxu1 %v930_v5  ;;  %v2483_v60 = vpack.c.bf16 %v1049_v9, %v1048_v36 }
 0x1ae   : > { %v933_v31 = vmax.f32 %v917_v22, 0.0  ;;  %2206 = vmatmul.mubr.f32.gmra.mrb[4].mxu1 %v931_v3 }
 0x1af   : > { %v932_v34 = vmax.f32 %v916_v30, 0.0  ;;  %v2157_v35 = vpop.f32.mrb[8].mxu0  ;;  %2474 = vmatpush3.bf16.msra.mxu1 %v2471_v61  ;;  %v3309_v38 = vsel %vm314_vm0, %v945_v55, %v946_v28  ;;  %v3313_v39 = vsel %vm314_vm0, %v946_v28, %v947_v18  ;;  %v3317_v43 = vsel %vm367_vm2, %v993_v56, %v994_v29 }
 0x1b0   : > { %v949_v44 = vrot.slane %v933_v31, 7  ;;  %v997_v45 = vrot.slane %v933_v31, 1  ;;  %v919_v46 = vadd.f32 %v2157_v35, %v3264_v25  ;;  %v848_v47 = vpop.f32.mrb[9].mxu0  ;;  %2476 = vmatprep.subr.bf16.mxu1 %v2475_v4  ;;  %v3322_v48 = vsel %vm367_vm2, %v994_v29, %v995_v19  ;;  %v1053_v35 = vld [vmem:[#allocation7 + $0x78] sm:$0xff] }
 0x1b1   : > { %v948_v51 = vrot.slane %v932_v34, 7  ;;  %v996_v52 = vrot.slane %v932_v34, 1  ;;  %v918_v55 = vadd.f32 %v3264_v25, %v848_v47  ;;  %2208 = vmatprep.mubr.f32.mxu1 %v932_v34  ;;  %v2487_v30 = vpack.c.bf16 %v1051_v63, %v1050_v62  ;;  %v1052_v34 = vld [vmem:[#allocation7 + $0x70] sm:$0xff] }
 0x1b2   : > { %v935_v59 = vmax.f32 %v919_v46, 0.0  ;;  %2209 = vmatmul.mubr.f32.gmra.mrb[6].mxu1 %v933_v31  ;;  %v2491_v62 = vpack.c.bf16 %v1053_v35, %v1052_v34  ;;  %v1360_v35 = vld [vmem:[#allocation7 + $0x100] sm:$0xff] }
 0x1b3   : > { %v934_v56 = vmax.f32 %v918_v55, 0.0  ;;  %v2160_v61 = vpop.f32.mrb[10].mxu0  ;;  %2478 = vmatpush3.bf16.msra.mxu1 %v2475_v4  ;;  %v3327_v0 = vsel %vm314_vm0, %v947_v18, %v948_v51  ;;  %v3331_v3 = vsel %vm314_vm0, %v948_v51, %v949_v44  ;;  %v3335_v5 = vsel %vm367_vm2, %v995_v19, %v996_v52 }
 0x1b4   : > { %v951_v6 = vrot.slane %v935_v59, 7  ;;  %v999_v10 = vrot.slane %v935_v59, 1  ;;  %v921_v11 = vadd.f32 %v2160_v61, %v3264_v25  ;;  %v858_v22 = vpop.f32.mrb[11].mxu0  ;;  %2480 = vmatprep.subr.bf16.mxu1 %v2479_v32  ;;  %v3340_v4 = vsel %vm367_vm2, %v996_v52, %v997_v45 }
 0x1b5   : > { %v950_v18 = vrot.slane %v934_v56, 7  ;;  %v998_v26 = vrot.slane %v934_v56, 1  ;;  %v920_v28 = vadd.f32 %v3264_v25, %v858_v22  ;;  %2211 = vmatprep.mubr.f32.mxu1 %v934_v56 }
 0x1b6   : > { %v937_v29 = vmax.f32 %v921_v11, 0.0  ;;  %2212 = vmatmul.mubr.f32.gmra.mrb[8].mxu1 %v935_v59 }
 0x1b7   : > { %v936_v19 = vmax.f32 %v920_v28, 0.0  ;;  %v2163_v31 = vpop.f32.mrb[12].mxu0  ;;  %2482 = vmatpush3.bf16.msra.mxu1 %v2479_v32  ;;  %v3345_v36 = vsel %vm314_vm0, %v949_v44, %v950_v18  ;;  %v3349_v9 = vsel %vm314_vm0, %v950_v18, %v951_v6  ;;  %v3353_v46 = vsel %vm367_vm2, %v997_v45, %v998_v26 }
 0x1b8   : > { %v953_v47 = vrot.slane %v937_v29, 7  ;;  %v1001_v51 = vrot.slane %v937_v29, 1  ;;  %v923_v52 = vadd.f32 %v2163_v31, %v3264_v25  ;;  %v868_v55 = vpop.f32.mrb[13].mxu0  ;;  %2484 = vmatprep.subr.bf16.mxu1 %v2483_v60  ;;  %v3358_v32 = vsel %vm367_vm2, %v998_v26, %v999_v10 }
 0x1b9   : > { %v952_v44 = vrot.slane %v936_v19, 7  ;;  %v1000_v59 = vrot.slane %v936_v19, 1  ;;  %v922_v56 = vadd.f32 %v3264_v25, %v868_v55  ;;  %2214 = vmatprep.mubr.f32.mxu1 %v936_v19 }
 0x1ba   : > { %v939_v61 = vmax.f32 %v923_v52, 0.0  ;;  %2215 = vmatmul.mubr.f32.gmra.mrb[10].mxu1 %v937_v29  ;;  %v1361_v52 = vld [vmem:[#allocation7 + $0x108] sm:$0xff] }
 0x1bb   : > { %v938_v45 = vmax.f32 %v922_v56, 0.0  ;;  %v2166_v63 = vpop.f32.mrb[14].mxu0  ;;  %2486 = vmatpush3.bf16.msra.mxu1 %v2483_v60  ;;  %v3363_v11 = vsel %vm314_vm0, %v951_v6, %v952_v44  ;;  %v3367_v22 = vsel %vm314_vm0, %v952_v44, %v953_v47  ;;  %v3371_v18 = vsel %vm367_vm2, %v999_v10, %v1000_v59 }
 0x1bc   : > { %v955_v26 = vrot.slane %v939_v61, 7  ;;  %v1003_v28 = vrot.slane %v939_v61, 1  ;;  %v925_v29 = vadd.f32 %v2166_v63, %v3264_v25  ;;  %v878_v19 = vpop.f32.mrb[15].mxu0  ;;  %2488 = vmatprep.subr.bf16.mxu1 %v2487_v30  ;;  %v3376_v60 = vsel %vm367_vm2, %v1000_v59, %v1001_v51 }
 0x1bd   : > { %v954_v6 = vrot.slane %v938_v45, 7  ;;  %v1002_v31 = vrot.slane %v938_v45, 1  ;;  %v924_v34 = vadd.f32 %v3264_v25, %v878_v19  ;;  %2217 = vmatprep.mubr.f32.mxu1 %v938_v45  ;;  %v2495_v45 = vpack.c.bf16 %v1361_v52, %v1360_v35  ;;  %v1363_v19 = vld [vmem:[#allocation7 + $0x118] sm:$0xff]  ;;  %v1366_v52 = vld [vmem:[#allocation7 + $0x130] sm:$0xff] }
 0x1be   : > { %v941_v55 = vmax.f32 %v925_v29, 0.0  ;;  %2218 = vmatmul.mubr.f32.gmra.mrb[12].mxu1 %v939_v61 }
 0x1bf   : > { %v940_v10 = vmax.f32 %v924_v34, 0.0  ;;  %2490 = vmatpush3.bf16.msra.mxu1 %v2487_v30  ;;  %v961_v44 = vsel %vm314_vm0, %v953_v47, %v954_v6  ;;  %v3383_v56 = vsel %vm314_vm0, %v954_v6, %v955_v26  ;;  %v3387_v59 = vsel %vm367_vm2, %v1001_v51, %v1002_v31  ;;  %v1362_v47 = vld [vmem:[#allocation7 + $0x110] sm:$0xff] }
 0x1c0   : > { %v957_v63 = vrot.slane %v941_v55, 7  ;;  %v1005_v25 = vrot.slane %v941_v55, 1  ;;  %2492 = vmatprep.subr.bf16.mxu1 %v2491_v62  ;;  %v3391_v61 = vsel %vm367_vm2, %v1002_v31, %v1003_v28  ;;  %v2499_v33 = vpack.c.bf16 %v1363_v19, %v1362_v47 }
 0x1c1   : > { %v956_v30 = vrot.slane %v940_v10, 7  ;;  %v1004_v29 = vrot.slane %v940_v10, 1  ;;  %2220 = vmatprep.mubr.f32.mxu1 %v940_v10  ;;  %v1368_v10 = vld [vmem:[#allocation7 + $0x140] sm:$0xff] }
 0x1c2   : > { %2221 = vmatmul.mubr.f32.gmra.mrb[14].mxu1 %v941_v55  ;;  %v973_v51 = vsel %vm314_vm0, %v957_v63, %v942_v40  ;;  %v3401_v6 = vsel %vm367_vm2, %v1005_v25, %v990_v24  ;;  %v1364_v24 = vld [vmem:[#allocation7 + $0x120] sm:$0xff] }
 0x1c3   : > { %2494 = vmatpush3.bf16.msra.mxu1 %v2491_v62  ;;  %2255 = vmatprep.mubr.msk.f32.mxu1 %vm1805_vm1, %v973_v51  ;;  %v959_v31 = vsel %vm314_vm0, %v955_v26, %v956_v30  ;;  %v958_v34 = vsel %vm314_vm0, %v956_v30, %v957_v63  ;;  %v3411_v35 = vsel %vm367_vm2, %v1003_v28, %v1004_v29  ;;  %v1365_v62 = vld [vmem:[#allocation7 + $0x128] sm:$0xff]  ;;  %v1367_v28 = vld [vmem:[#allocation7 + $0x138] sm:$0xff]  ;;  %v1370_v63 = vld [vmem:[#allocation7 + $0x150] sm:$0xff] }
 0x1c4   : > { %2496 = vmatprep.subr.bf16.mxu1 %v2495_v45  ;;  %v3415_v40 = vsel %vm367_vm2, %v1004_v29, %v1005_v25  ;;  %v2503_v26 = vpack.c.bf16 %v1365_v62, %v1364_v24  ;;  %v2507_v55 = vpack.c.bf16 %v1367_v28, %v1366_v52  ;;  %v1372_v25 = vld [vmem:[#allocation7 + $0x160] sm:$0xff] }
 0x1c6   : > { %2256 = vmatmul.mubr.f32.vlgmr.msra.gmra.mrb[0].mxu1 %v3279_v53  ;;  %v1369_v53 = vld [vmem:[#allocation7 + $0x148] sm:$0xff] }
 0x1c7   : > { %2258 = vmatprep.mubr.msk.f32.mxu1 %vm1805_vm1, %v3291_v12  ;;  %2498 = vmatpush3.bf16.msra.mxu1 %v2495_v45  ;;  %v2511_v12 = vpack.c.bf16 %v1369_v53, %v1368_v10  ;;  %v1374_v45 = vld [vmem:[#allocation7 + $0x170] sm:$0xff] }
 0x1c8   : > { %2500 = vmatprep.subr.bf16.mxu1 %v2499_v33 }
 0x1ca   : > { %2259 = vmatmul.mubr.f32.gmra.mrb[2].mxu1 %v3295_v13  ;;  %v1371_v13 = vld [vmem:[#allocation7 + $0x158] sm:$0xff] }
 0x1cb   : > { %2261 = vmatprep.mubr.msk.f32.mxu1 %vm1805_vm1, %v3309_v38  ;;  %2502 = vmatpush3.bf16.msra.mxu1 %v2499_v33  ;;  %v2515_v38 = vpack.c.bf16 %v1371_v13, %v1370_v63 }
 0x1cc   : > { %2504 = vmatprep.subr.bf16.mxu1 %v2503_v26 }
 0x1ce   : > { %2262 = vmatmul.mubr.f32.gmra.mrb[4].mxu1 %v3313_v39  ;;  %v1373_v39 = vld [vmem:[#allocation7 + $0x168] sm:$0xff] }
 0x1cf   : > { %2264 = vmatprep.mubr.msk.f32.mxu1 %vm1805_vm1, %v3327_v0  ;;  %2506 = vmatpush3.bf16.msra.mxu1 %v2503_v26  ;;  %v2519_v0 = vpack.c.bf16 %v1373_v39, %v1372_v25 }
 0x1d0   : > { %2508 = vmatprep.subr.bf16.mxu1 %v2507_v55 }
 0x1d2   : > { %2265 = vmatmul.mubr.f32.gmra.mrb[6].mxu1 %v3331_v3  ;;  %v1375_v3 = vld [vmem:[#allocation7 + $0x178] sm:$0xff] }
 0x1d3   : > { %2267 = vmatprep.mubr.msk.f32.mxu1 %vm1805_vm1, %v3345_v36  ;;  %2510 = vmatpush3.bf16.msra.mxu1 %v2507_v55  ;;  %v2523_v36 = vpack.c.bf16 %v1375_v3, %v1374_v45 }
 0x1d4   : > { %2512 = vmatprep.subr.bf16.mxu1 %v2511_v12 }
 0x1d6   : > { %2268 = vmatmul.mubr.f32.gmra.mrb[8].mxu1 %v3349_v9 }
 0x1d7   : > { %2270 = vmatprep.mubr.msk.f32.mxu1 %vm1805_vm1, %v3363_v11  ;;  %2514 = vmatpush3.bf16.msra.mxu1 %v2511_v12 }
 0x1d8   : > { %2516 = vmatprep.subr.bf16.mxu1 %v2515_v38 }
 0x1da   : > { %2271 = vmatmul.mubr.f32.gmra.mrb[10].mxu1 %v3367_v22 }
 0x1db   : > { %2273 = vmatprep.mubr.msk.f32.mxu1 %vm1805_vm1, %v961_v44  ;;  %2518 = vmatpush3.bf16.msra.mxu1 %v2515_v38 }
 0x1dc   : > { %2520 = vmatprep.subr.bf16.mxu1 %v2519_v0 }
 0x1de   : > { %2274 = vmatmul.mubr.f32.gmra.mrb[12].mxu1 %v3383_v56 }
 0x1df   : > { %2276 = vmatprep.mubr.msk.f32.mxu1 %vm1805_vm1, %v959_v31  ;;  %2522 = vmatpush3.bf16.msra.mxu1 %v2519_v0 }
 0x1e0   : > { %2524 = vmatprep.subr.bf16.mxu1 %v2523_v36 }
 0x1e2   : > { %2277 = vmatmul.mubr.f32.gmra.mrb[14].mxu1 %v958_v34 }
 0x1e3   : > { %2526 = vmatpush3.bf16.msra.mxu1 %v2523_v36  ;;  %2311 = vmatprep.mubr.f32.mxu1 %v3285_v54 }
 0x1e6   : > { %2312 = vmatmul.mubr.msk.f32.vlgmr.msra.gmra.mrb[0].mxu1 %vm1806_vm3, %v3299_v16 }
 0x1e7   : > { %2314 = vmatprep.mubr.f32.mxu1 %v3304_v27 }
 0x1ea   : > { %2315 = vmatmul.mubr.msk.f32.gmra.mrb[2].mxu1 %vm1806_vm3, %v3317_v43 }
 0x1eb   : > { %2317 = vmatprep.mubr.f32.mxu1 %v3322_v48 }
 0x1ee   : > { %2318 = vmatmul.mubr.msk.f32.gmra.mrb[4].mxu1 %vm1806_vm3, %v3335_v5  ;;  %v2662_v5 = vld [vmem:[%s3046_s12] sm:$0xff] }
 0x1ef   : > { %2320 = vmatprep.mubr.f32.mxu1 %v3340_v4 }
 0x1f2   : > { %2321 = vmatmul.mubr.msk.f32.gmra.mrb[6].mxu1 %vm1806_vm3, %v3353_v46 }
 0x1f3   : > { %2323 = vmatprep.mubr.f32.mxu1 %v3358_v32 }
 0x1f6   : > { %2324 = vmatmul.mubr.msk.f32.gmra.mrb[8].mxu1 %vm1806_vm3, %v3371_v18 }
 0x1f7   : > { %2326 = vmatprep.mubr.f32.mxu1 %v3376_v60 }
 0x1fa   : > { %2327 = vmatmul.mubr.msk.f32.gmra.mrb[10].mxu1 %vm1806_vm3, %v3387_v59 }
 0x1fb   : > { %2329 = vmatprep.mubr.f32.mxu1 %v3391_v61 }
 0x1fe   : > { %2330 = vmatmul.mubr.msk.f32.gmra.mrb[12].mxu1 %vm1806_vm3, %v3411_v35 }
 0x1ff   : > { %2332 = vmatprep.mubr.f32.mxu1 %v3415_v40 }
 0x202   : > { %2333 = vmatmul.mubr.msk.f32.gmra.mrb[14].mxu1 %vm1806_vm3, %v3401_v6 }
 0x2b9   : > { %v2313_v54 = vpop.f32.mrb[0].mxu1 }
 0x2ba   : > { %v1545_v16 = vadd.f32 %v2313_v54, %v3478_v20  ;;  %v1442_v27 = vpop.f32.mrb[1].mxu1 }
 0x2bb   : > { %v1544_v43 = vadd.f32 %v3478_v20, %v1442_v27 }
 0x2bc   : > { %v1561_v48 = vadd.f32 %v1545_v16, %v3061_v41 }
 0x2bd   : > { %v1560_v4 = vadd.f32 %v2662_v5, %v1544_v43  ;;  %v2316_v9 = vpop.f32.mrb[2].mxu1 }
 0x2be   : > { %v1577_v46 = vmax.f32 %v1561_v48, 0.0  ;;  %v1547_v37 = vadd.f32 %v2316_v9, %v3478_v20  ;;  %v1452_v32 = vpop.f32.mrb[3].mxu1 }
 0x2bf   : > { %v1576_v11 = vmax.f32 %v1560_v4, 0.0  ;;  %v1546_v22 = vadd.f32 %v3478_v20, %v1452_v32 }
 0x2c0   : > { %1593 = vst [vmem:[%s3488_s10 + $0x8] sm:$0xff] %v1577_v46  ;;  %v1563_v41 = vadd.f32 %v1547_v37, %v3069_v49 }
 0x2c1   : > { %1592 = vst [vmem:[%s3488_s10] sm:$0xff] %v1576_v11  ;;  %v1562_v18 = vadd.f32 %v1546_v22, %v3064_v42  ;;  %v2319_v60 = vpop.f32.mrb[4].mxu1 }
 0x2c2   : > { %v1579_v44 = vmax.f32 %v1563_v41, 0.0  ;;  %v1549_v56 = vadd.f32 %v2319_v60, %v3478_v20  ;;  %v1462_v59 = vpop.f32.mrb[5].mxu1 }
 0x2c3   : > { %v1578_v61 = vmax.f32 %v1562_v18, 0.0  ;;  %v1548_v30 = vadd.f32 %v3478_v20, %v1462_v59 }
 0x2c4   : > { %1595 = vst [vmem:[%s3488_s10 + $0x18] sm:$0xff] %v1579_v44  ;;  %v1565_v29 = vadd.f32 %v1549_v56, %v3077_v57 }
 0x2c5   : > { %1594 = vst [vmem:[%s3488_s10 + $0x10] sm:$0xff] %v1578_v61  ;;  %v1564_v47 = vadd.f32 %v1548_v30, %v3072_v50  ;;  %v2322_v49 = vpop.f32.mrb[6].mxu1 }
 0x2c6   : > { %v1581_v19 = vmax.f32 %v1565_v29, 0.0  ;;  %v1551_v42 = vadd.f32 %v2322_v49, %v3478_v20  ;;  %v1472_v51 = vpop.f32.mrb[7].mxu1 }
 0x2c7   : > { %v1580_v6 = vmax.f32 %v1564_v47, 0.0  ;;  %v1550_v31 = vadd.f32 %v3478_v20, %v1472_v51 }
 0x2c8   : > { %1597 = vst [vmem:[%s3488_s10 + $0x28] sm:$0xff] %v1581_v19  ;;  %v1567_v34 = vadd.f32 %v1551_v42, %v3085_v1 }
 0x2c9   : > { %1596 = vst [vmem:[%s3488_s10 + $0x20] sm:$0xff] %v1580_v6  ;;  %v1566_v35 = vadd.f32 %v1550_v31, %v3080_v58  ;;  %v2325_v57 = vpop.f32.mrb[8].mxu1 }
 0x2ca   : > { %v1583_v33 = vmax.f32 %v1567_v34, 0.0  ;;  %v1553_v50 = vadd.f32 %v2325_v57, %v3478_v20  ;;  %v1482_v40 = vpop.f32.mrb[9].mxu1 }
 0x2cb   : > { %v1582_v24 = vmax.f32 %v1566_v35, 0.0  ;;  %v1552_v62 = vadd.f32 %v3478_v20, %v1482_v40 }
 0x2cc   : > { %1599 = vst [vmem:[%s3488_s10 + $0x38] sm:$0xff] %v1583_v33  ;;  %v1569_v26 = vadd.f32 %v1553_v50, %v3093_v7 }
 0x2cd   : > { %1598 = vst [vmem:[%s3488_s10 + $0x30] sm:$0xff] %v1582_v24  ;;  %v1568_v52 = vadd.f32 %v1552_v62, %v3088_v2  ;;  %v2328_v1 = vpop.f32.mrb[10].mxu1 }
 0x2ce   : > { %v1585_v28 = vmax.f32 %v1569_v26, 0.0  ;;  %v1555_v58 = vadd.f32 %v2328_v1, %v3478_v20  ;;  %v1492_v55 = vpop.f32.mrb[11].mxu1 }
 0x2cf   : > { %v1584_v10 = vmax.f32 %v1568_v52, 0.0  ;;  %v1554_v53 = vadd.f32 %v3478_v20, %v1492_v55 }
 0x2d0   : > { %1601 = vst [vmem:[%s3488_s10 + $0x48] sm:$0xff] %v1585_v28  ;;  %v1571_v12 = vadd.f32 %v1555_v58, %v3101_v14 }
 0x2d1   : > { %1600 = vst [vmem:[%s3488_s10 + $0x40] sm:$0xff] %v1584_v10  ;;  %v1570_v63 = vadd.f32 %v1554_v53, %v3096_v8  ;;  %v2331_v7 = vpop.f32.mrb[12].mxu1 }
 0x2d2   : > { %v1587_v13 = vmax.f32 %v1571_v12, 0.0  ;;  %v1557_v2 = vadd.f32 %v2331_v7, %v3478_v20  ;;  %v1502_v38 = vpop.f32.mrb[13].mxu1 }
 0x2d3   : > { %v1586_v25 = vmax.f32 %v1570_v63, 0.0  ;;  %v1556_v39 = vadd.f32 %v3478_v20, %v1502_v38 }
 0x2d4   : > { %1603 = vst [vmem:[%s3488_s10 + $0x58] sm:$0xff] %v1587_v13  ;;  %v1573_v0 = vadd.f32 %v1557_v2, %v3114_v21 }
 0x2d5   : > { %1602 = vst [vmem:[%s3488_s10 + $0x50] sm:$0xff] %v1586_v25  ;;  %v1572_v14 = vadd.f32 %v1556_v39, %v3104_v15  ;;  %v2334_v45 = vpop.f32.mrb[14].mxu1 }
 0x2d6   : > { %v1589_v8 = vmax.f32 %v1573_v0, 0.0  ;;  %v1559_v3 = vadd.f32 %v2334_v45, %v3478_v20  ;;  %v1512_v36 = vpop.f32.mrb[15].mxu1 }
 0x2d7   : > { %v1588_v54 = vmax.f32 %v1572_v14, 0.0  ;;  %v1558_v16 = vadd.f32 %v3478_v20, %v1512_v36 }
 0x2d8   : > { %1605 = vst [vmem:[%s3488_s10 + $0x68] sm:$0xff] %v1589_v8  ;;  %v1575_v21 = vadd.f32 %v1559_v3, %v3107_v17 }
 0x2d9   : > { %1604 = vst [vmem:[%s3488_s10 + $0x60] sm:$0xff] %v1588_v54  ;;  %v1574_v15 = vadd.f32 %v1558_v16, %v3118_v23 }
 0x2da   : > { %v1591_v27 = vmax.f32 %v1575_v21, 0.0 }
 0x2db   : > { %v1590_v20 = vmax.f32 %v1574_v15, 0.0 }
 0x2dc   : > { %1607 = vst [vmem:[%s3488_s10 + $0x78] sm:$0xff] %v1591_v27 }
 0x2dd   : > { %1606 = vst [vmem:[%s3488_s10 + $0x70] sm:$0xff] %v1590_v20 }
 0x2de   : > { %2762 = shalt.err (!%p2759_p1)
}
 0x2df   : > { %s2763_s12 = scalar_lea.hbm %s3535_s11, 2048  ;;  %s2767_s15 = scalar_lea.hbm %s3588_s5, 4096 }
 0x2e0   : > { %p2764_p13 = scmp.ne.s32.totalorder %s3535_s11, %s2763_s12  ;;  %p2768_p4 = scmp.lt.u32.totalorder %s3535_s11, %s3588_s5 }
 0x2e1   : > { %p2769_p5 = scmp.lt.u32.totalorder %s2767_s15, %s2763_s12  ;;  %p2771_p11 = scmp.lt.u32.totalorder %s2763_s12, %s3535_s11 }
 0x2e2   : > { %p2765_p6 = pnand %p2764_p13, %p3602_p0 }
 0x2e3   : > { %p2770_p8 = por %p2769_p5, %p2768_p4 }
 0x2e4   : > { %p2766_p10 = pneg %p2765_p6 }
 0x2e5   : > { %p2772_p2 = por %p2771_p11, %p2770_p8 }
 0x2e7   : > { %p2773_p3 = pnand %p2772_p2, %p2766_p10 }
 0x2e9   : > { %2776 = shalt.err (!%p2773_p3)
}
 0x2ea   : > { %s2827_s28 = smov 128   ;;  %s2828_s9 = smov 8  }
 0x2eb   : > { %2601 = dma.vmem_to_hbm [thread:$0]  (%p3602_p0), %s3537_s13, 2048, %s3535_s11, %s1609_s22, %s2827_s28, %s2827_s28, %s2828_s9  }
 0x2ec PF: > { %s1638_s30 = sand.u32 1, %s2807_s18   ;;  %p3603_p7 = scmp.ne.s32.totalorder %s3593_s25, 0 }
 0x2ed   : > { %p3604_p9 = scmp.ge.s32.totalorder %s2819_s21, 2  ;;  %s1639_s17 = scalar_lea.sflag [#allocation4], %s1638_s30 }
 0x2ef   : > { %p2615_p12 = pnand %p3604_p9, %p3603_p7 }
 0x2f1   : > { %2802 = dma.done.wait (!%p2615_p12), %s1639_s17, 2048  }
 0x2f2   : > { %2804 = vsyncadd (!%p2615_p12), %s1639_s17, 4294965248  ;;  %p19_p1 = scmp.ge.s32.totalorder %s2975_s29, 4   ;;  %s3605_s18 = smov %s2811_s19 }
 0x2f3   : > { %s3606_s19 = smov %s2815_s20  ;;  %s3607_s20 = smov %s2991_s27 }
 0x2f4   : > { %s3608_s21 = smov %s2975_s29  ;;  %21 = sbr.rel (!%p19_p1) target bundleno = 6 (0x6), region = 93 }
 0x2fb   :  { %1644 = vsyncpa [#allocation3], 1 }
 0x2fc   :  { %1646 = vsyncpa [#allocation3 + $0x1], 1 }
 0x2fd   :  { %1647 = vsyncpa [#allocation6], 1 }
 0x2fe   :  { %1648 = vsyncpa [#allocation4], 1 }
 0x2ff   :  { %1650 = vsyncpa [#allocation4 + $0x1], 1 }

</bundles_post_ra>
